<compile_context>
chip_gen: v6e
topology: v6e:2x2x1
jax: 0.10.0
libtpu: 0.0.40
codegen_flags: <defaults>
</compile_context>

<pallas_src>
import math
import numpy as np
import jax
import jax.numpy as jnp
from jax import lax
from jax.experimental import pallas as pl
from jax.experimental.pallas import tpu as pltpu

# Hyperparameters fixed by PatchEmbedding.__init__
EMB = 40          # emb_size
C1_OUT = 40       # Conv2d(1, 40, (1, 25)) out channels
KT = 25           # temporal kernel width
KH = 22           # spatial kernel height == number of EEG channels
POOL_K = 75       # AvgPool2d kernel (1, 75)
POOL_S = 15       # AvgPool2d stride (1, 15)
BN_EPS = 1e-5


def _patch_embed_kernel(x_ref, w_ref, bias_ref, pmt_ref, wpt_ref, bp_ref, o_ref):
    """B_blk batch elements of PatchEmbedding.forward.

    x_ref   : (B_blk, 22, T)   f32 input slab (channel x time)
    w_ref   : (40, 550)        bf16 composite conv filter (BN scale folded),
                               flat index = k*KH + h
    bias_ref: (40, 1)          f32 folded bias (conv biases + BN shift)
    pmt_ref : (wout, wc)       f32 average-pool matrix, transposed
    wpt_ref : (40, EMB)        f32 1x1 projection weights, transposed
    bp_ref  : (1, EMB)         f32 projection bias (row vector)
    o_ref   : (B_blk, wout, EMB)
    """
    wc = pmt_ref.shape[1]
    b_blk = x_ref.shape[0]

    # Hoist all constant loads out of the per-batch loop.
    w = w_ref[...]            # (40, 550) bf16
    bias = bias_ref[...]      # (40, 1)   f32
    pmt = pmt_ref[...]        # (wout, wc) f32
    wpt = wpt_ref[...]        # (40, EMB) f32
    bp = bp_ref[...]          # (1, EMB)  f32

    for b in range(b_blk):                           # static unroll, B_blk is small
        xb = x_ref[b].astype(jnp.bfloat16)           # (22, T) -> bf16 once
        # im2col: patches[k*KH + h, t] = xb[h, t + k]
        cols = [xb[:, k:k + wc] for k in range(KT)]
        patches = jnp.concatenate(cols, axis=0)      # (550, wc) bf16

        # fused conv1 ∘ conv2 (+ BN scale): single MXU matmul with K = 550
        z = jnp.dot(w, patches, preferred_element_type=jnp.float32)   # (40, wc) f32
        y = z + bias                                 # conv biases + BN shift (folded)
        y = jnp.where(y > 0.0, y, jnp.exp(y) - 1.0)  # ELU(alpha=1)

        # AvgPool2d((1,75),(1,15)) as an A·Bᵀ contraction -> (wout, 40),
        # then 1x1 projection as a plain matmul -> (wout, EMB).
        pooled_t = lax.dot_general(pmt, y, (((1,), (1,)), ((), ())),
                                   preferred_element_type=jnp.float32)  # (wout, 40)
        proj_t = jnp.dot(pooled_t, wpt, preferred_element_type=jnp.float32) + bp

        o_ref[b] = proj_t.astype(o_ref.dtype)        # (wout, EMB) -> module layout
    # TODO(synk): Dropout(0.5) omitted (eval-mode identity).


def _pick_batch_block(B, cap=8):
    """Largest divisor of B <= cap that still leaves >= 2 grid steps (megacore)."""
    cands = [c for c in range(1, min(B, cap) + 1) if B % c == 0]
    for c in reversed(cands):
        if B // c >= 2:
            return c
    return cands[-1]


def _prepare_params(w1, b1, w2, b2, gamma, beta, rmean, rvar, wp, bp):
    """Fold conv1, conv2 and BN (eval) into one (40,550) bf16 filter + f32 bias."""
    w1m = jnp.asarray(w1).reshape(C1_OUT, KT)             # (ci, k)
    w2m = jnp.asarray(w2)[:, :, :, 0]                     # (co, ci, h)
    weff = jnp.einsum('oih,ik->ohk', w2m, w1m)            # (co, h, k)
    b2eff = b2 + jnp.einsum('oih,i->o', w2m, b1)          # conv1 bias pushed through conv2

    inv_std = 1.0 / jnp.sqrt(rvar + BN_EPS)
    bns = gamma * inv_std                                 # BN scale (eval)
    bnb = beta - rmean * bns                              # BN shift (eval)
    weff = weff * bns[:, None, None]                      # fold BN scale into filter
    bias_all = (bns * b2eff + bnb).reshape(C1_OUT, 1).astype(jnp.float32)

    # flatten to (40, 550) with flat index k*KH + h to match the in-kernel im2col
    w_flat = jnp.transpose(weff, (0, 2, 1)).reshape(C1_OUT, KT * KH)
    w_flat = w_flat.astype(jnp.bfloat16)                  # bf16 MXU operand

    wpt = jnp.asarray(wp)[:, :, 0, 0].T.astype(jnp.float32)     # (40, EMB)
    bp_row = jnp.asarray(bp).reshape(1, EMB).astype(jnp.float32)  # (1, EMB)
    return w_flat, bias_all, wpt, bp_row


def _pool_matrix_t(wc, wout):
    """Transposed pooling matrix: pmT[j, t] = 1/75 if t in window j else 0."""
    j = np.arange(wout)[:, None]
    t = np.arange(wc)[None, :]
    pmt = ((t >= j * POOL_S) & (t < j * POOL_S + POOL_K)).astype(np.float32) / POOL_K
    return jnp.asarray(pmt)                                # (wout, wc)


def patch_embedding(x, w1, b1, w2, b2, gamma, beta, rmean, rvar, wp, bp):
    """x: (B, 1, 22, T) NCHW float32 -> (B, Wout, EMB)."""
    B = x.shape[0]
    T = x.shape[-1]
    assert x.shape[1] == 1 and x.shape[2] == KH
    wc = T - KT + 1                          # width after temporal conv
    assert wc >= POOL_K, "sequence too short for the (1,75) pool window"
    wout = (wc - POOL_K) // POOL_S + 1       # width after avg pool

    # Tiny weight prep (cacheable across calls): composite filter + pool matrix.
    w_flat, bias_all, wpt, bp_row = _prepare_params(
        w1, b1, w2, b2, gamma, beta, rmean, rvar, wp, bp)
    pmt = _pool_matrix_t(wc, wout)

    b_blk = _pick_batch_block(B)
    x_slab = x[:, 0, :, :].astype(jnp.float32)            # (B, 22, T)

    out = pl.pallas_call(
        _patch_embed_kernel,
        out_shape=jax.ShapeDtypeStruct((B, wout, EMB), jnp.float32),
        grid_spec=pltpu.PrefetchScalarGridSpec(
            num_scalar_prefetch=0,
            grid=(B // b_blk,),
            in_specs=[
                pl.BlockSpec((b_blk, KH, T), lambda i: (i, 0, 0)),        # x block
                pl.BlockSpec((C1_OUT, KT * KH), lambda i: (0, 0)),        # composite filter
                pl.BlockSpec((C1_OUT, 1), lambda i: (0, 0)),              # folded bias
                pl.BlockSpec((wout, wc), lambda i: (0, 0)),               # pool matrix (T)
                pl.BlockSpec((C1_OUT, EMB), lambda i: (0, 0)),            # projection W (T)
                pl.BlockSpec((1, EMB), lambda i: (0, 0)),                 # projection b
            ],
            out_specs=pl.BlockSpec((b_blk, wout, EMB), lambda i: (i, 0, 0)),
        ),
        compiler_params=pltpu.CompilerParams(
            dimension_semantics=("parallel",)),
    )(x_slab, w_flat, bias_all, pmt, wpt, bp_row)

    # Kernel already writes 'b (h w) e' layout (h == 1): (B, wout, EMB).
    return out


def reference(x, params):
    """Independent pure-JAX reference of the PyTorch forward (eval mode, f32)."""
    w1, b1, w2, b2, gamma, beta, rmean, rvar, wp, bp = params
    dn = ('NCHW', 'OIHW', 'NCHW')
    hp = lax.Precision.HIGHEST
    y = lax.conv_general_dilated(x, w1, (1, 1), 'VALID',
                                 dimension_numbers=dn, precision=hp)
    y = y + b1[None, :, None, None]
    y = lax.conv_general_dilated(y, w2, (1, 1), 'VALID',
                                 dimension_numbers=dn, precision=hp)
    y = y + b2[None, :, None, None]
    y = (y - rmean[None, :, None, None]) / jnp.sqrt(rvar[None, :, None, None] + BN_EPS)
    y = y * gamma[None, :, None, None] + beta[None, :, None, None]
    y = jnp.where(y > 0.0, y, jnp.exp(y) - 1.0)
    y = lax.reduce_window(y, 0.0, lax.add,
                          (1, 1, 1, POOL_K), (1, 1, 1, POOL_S), 'VALID') / POOL_K
    y = lax.conv_general_dilated(y, wp, (1, 1), 'VALID',
                                 dimension_numbers=dn, precision=hp)
    y = y + bp[None, :, None, None]
    B, E, H, W = y.shape
    return jnp.transpose(y.reshape(B, E, H * W), (0, 2, 1))


if __name__ == "__main__":
    key = jax.random.PRNGKey(0)
    keys = jax.random.split(key, 11)
    B, T = 4, 144                                 # T >= 99 so the pool window fits

    x = jax.random.normal(keys[0], (B, 1, KH, T), jnp.float32)

    # Deterministic, PyTorch-default-style uniform(-1/sqrt(fan_in), ..) init.
    k1 = 1.0 / math.sqrt(1 * 1 * KT)
    w1 = jax.random.uniform(keys[1], (C1_OUT, 1, 1, KT), jnp.float32, -k1, k1)
    b1 = jax.random.uniform(keys[2], (C1_OUT,), jnp.float32, -k1, k1)
    k2 = 1.0 / math.sqrt(C1_OUT * KH * 1)
    w2 = jax.random.uniform(keys[3], (C1_OUT, C1_OUT, KH, 1), jnp.float32, -k2, k2)
    b2 = jax.random.uniform(keys[4], (C1_OUT,), jnp.float32, -k2, k2)
    gamma = 1.0 + 0.1 * jax.random.normal(keys[5], (C1_OUT,), jnp.float32)
    beta = 0.1 * jax.random.normal(keys[6], (C1_OUT,), jnp.float32)
    rmean = 0.1 * jax.random.normal(keys[7], (C1_OUT,), jnp.float32)
    rvar = jax.random.uniform(keys[8], (C1_OUT,), jnp.float32, 0.5, 1.5)
    kp = 1.0 / math.sqrt(C1_OUT)
    wp = jax.random.uniform(keys[9], (EMB, C1_OUT, 1, 1), jnp.float32, -kp, kp)
    bp = jax.random.uniform(keys[10], (EMB,), jnp.float32, -kp, kp)

    out = patch_embedding(x, w1, b1, w2, b2, gamma, beta, rmean, rvar, wp, bp)
    out = jax.block_until_ready(out)

    wout = ((T - KT + 1) - POOL_K) // POOL_S + 1
    assert out.shape == (B, wout, EMB), out.shape

    ref = reference(x, (w1, b1, w2, b2, gamma, beta, rmean, rvar, wp, bp))
    max_err = float(jnp.max(jnp.abs(out - ref)))
    # bf16 MXU operands (f32 accumulation) against an all-f32 reference:
    # expected max error ~5e-3; use 2e-2 as the pass threshold.
    if not (max_err < 2e-2):
        raise AssertionError(f"kernel/reference mismatch, max abs err = {max_err}")

    print("KERNEL_OK")
</pallas_src>

<mosaic_0001>
module attributes {stable_mosaic.version = 11 : i64} {
  func.func @_patch_embed_kernel(%arg0: i32, %arg1: memref<2x22x144xf32, #tpu.memory_space<vmem>>, %arg2: memref<40x550xbf16, #tpu.memory_space<vmem>>, %arg3: memref<40x1xf32, #tpu.memory_space<vmem>>, %arg4: memref<4x120xf32, #tpu.memory_space<vmem>>, %arg5: memref<40x40xf32, #tpu.memory_space<vmem>>, %arg6: memref<1x40xf32, #tpu.memory_space<vmem>>, %arg7: memref<2x4x40xf32, #tpu.memory_space<vmem>>) attributes {dimension_semantics = [#tpu.dimension_semantics<parallel>], iteration_bounds = array<i64: 2>, scalar_prefetch = 0 : i64, scratch_operands = 0 : i64, tpu.core_type = #tpu.core_type<tc>, window_params = [{transform_indices = @transform_0, window_bounds = array<i64: 2, 22, 144>}, {pipeline_mode = #tpu.pipeline_mode<synchronous>, transform_indices = @transform_1, window_bounds = array<i64: 40, 550>}, {pipeline_mode = #tpu.pipeline_mode<synchronous>, transform_indices = @transform_2, window_bounds = array<i64: 40, 1>}, {pipeline_mode = #tpu.pipeline_mode<synchronous>, transform_indices = @transform_3, window_bounds = array<i64: 4, 120>}, {pipeline_mode = #tpu.pipeline_mode<synchronous>, transform_indices = @transform_4, window_bounds = array<i64: 40, 40>}, {pipeline_mode = #tpu.pipeline_mode<synchronous>, transform_indices = @transform_5, window_bounds = array<i64: 1, 40>}, {transform_indices = @transform_6, window_bounds = array<i64: 2, 4, 40>}]} {
    %c0 = arith.constant 0 : index
    %c0_0 = arith.constant 0 : index
    %0 = vector.load %arg2[%c0, %c0_0] : memref<40x550xbf16, #tpu.memory_space<vmem>>, vector<40x550xbf16>
    %c0_1 = arith.constant 0 : index
    %c0_2 = arith.constant 0 : index
    %1 = vector.load %arg3[%c0_1, %c0_2] : memref<40x1xf32, #tpu.memory_space<vmem>>, vector<40x1xf32>
    %c0_3 = arith.constant 0 : index
    %c0_4 = arith.constant 0 : index
    %2 = vector.load %arg4[%c0_3, %c0_4] : memref<4x120xf32, #tpu.memory_space<vmem>>, vector<4x120xf32>
    %c0_5 = arith.constant 0 : index
    %c0_6 = arith.constant 0 : index
    %3 = vector.load %arg5[%c0_5, %c0_6] : memref<40x40xf32, #tpu.memory_space<vmem>>, vector<40x40xf32>
    %c0_7 = arith.constant 0 : index
    %c0_8 = arith.constant 0 : index
    %4 = vector.load %arg6[%c0_7, %c0_8] : memref<1x40xf32, #tpu.memory_space<vmem>>, vector<1x40xf32>
    %c0_9 = arith.constant 0 : index
    %c0_10 = arith.constant 0 : index
    %c0_11 = arith.constant 0 : index
    %5 = vector.load %arg1[%c0_9, %c0_10, %c0_11] : memref<2x22x144xf32, #tpu.memory_space<vmem>>, vector<1x22x144xf32>
    %6 = vector.shape_cast %5 : vector<1x22x144xf32> to vector<22x144xf32>
    %7 = arith.truncf %6 : vector<22x144xf32> to vector<22x144xbf16>
    %8 = vector.extract_strided_slice %7 {offsets = [0, 0], sizes = [22, 120], strides = [1, 1]} : vector<22x144xbf16> to vector<22x120xbf16>
    %9 = vector.extract_strided_slice %7 {offsets = [0, 1], sizes = [22, 120], strides = [1, 1]} : vector<22x144xbf16> to vector<22x120xbf16>
    %10 = vector.extract_strided_slice %7 {offsets = [0, 2], sizes = [22, 120], strides = [1, 1]} : vector<22x144xbf16> to vector<22x120xbf16>
    %11 = vector.extract_strided_slice %7 {offsets = [0, 3], sizes = [22, 120], strides = [1, 1]} : vector<22x144xbf16> to vector<22x120xbf16>
    %12 = vector.extract_strided_slice %7 {offsets = [0, 4], sizes = [22, 120], strides = [1, 1]} : vector<22x144xbf16> to vector<22x120xbf16>
    %13 = vector.extract_strided_slice %7 {offsets = [0, 5], sizes = [22, 120], strides = [1, 1]} : vector<22x144xbf16> to vector<22x120xbf16>
    %14 = vector.extract_strided_slice %7 {offsets = [0, 6], sizes = [22, 120], strides = [1, 1]} : vector<22x144xbf16> to vector<22x120xbf16>
    %15 = vector.extract_strided_slice %7 {offsets = [0, 7], sizes = [22, 120], strides = [1, 1]} : vector<22x144xbf16> to vector<22x120xbf16>
    %16 = vector.extract_strided_slice %7 {offsets = [0, 8], sizes = [22, 120], strides = [1, 1]} : vector<22x144xbf16> to vector<22x120xbf16>
    %17 = vector.extract_strided_slice %7 {offsets = [0, 9], sizes = [22, 120], strides = [1, 1]} : vector<22x144xbf16> to vector<22x120xbf16>
    %18 = vector.extract_strided_slice %7 {offsets = [0, 10], sizes = [22, 120], strides = [1, 1]} : vector<22x144xbf16> to vector<22x120xbf16>
    %19 = vector.extract_strided_slice %7 {offsets = [0, 11], sizes = [22, 120], strides = [1, 1]} : vector<22x144xbf16> to vector<22x120xbf16>
    %20 = vector.extract_strided_slice %7 {offsets = [0, 12], sizes = [22, 120], strides = [1, 1]} : vector<22x144xbf16> to vector<22x120xbf16>
    %21 = vector.extract_strided_slice %7 {offsets = [0, 13], sizes = [22, 120], strides = [1, 1]} : vector<22x144xbf16> to vector<22x120xbf16>
    %22 = vector.extract_strided_slice %7 {offsets = [0, 14], sizes = [22, 120], strides = [1, 1]} : vector<22x144xbf16> to vector<22x120xbf16>
    %23 = vector.extract_strided_slice %7 {offsets = [0, 15], sizes = [22, 120], strides = [1, 1]} : vector<22x144xbf16> to vector<22x120xbf16>
    %24 = vector.extract_strided_slice %7 {offsets = [0, 16], sizes = [22, 120], strides = [1, 1]} : vector<22x144xbf16> to vector<22x120xbf16>
    %25 = vector.extract_strided_slice %7 {offsets = [0, 17], sizes = [22, 120], strides = [1, 1]} : vector<22x144xbf16> to vector<22x120xbf16>
    %26 = vector.extract_strided_slice %7 {offsets = [0, 18], sizes = [22, 120], strides = [1, 1]} : vector<22x144xbf16> to vector<22x120xbf16>
    %27 = vector.extract_strided_slice %7 {offsets = [0, 19], sizes = [22, 120], strides = [1, 1]} : vector<22x144xbf16> to vector<22x120xbf16>
    %28 = vector.extract_strided_slice %7 {offsets = [0, 20], sizes = [22, 120], strides = [1, 1]} : vector<22x144xbf16> to vector<22x120xbf16>
    %29 = vector.extract_strided_slice %7 {offsets = [0, 21], sizes = [22, 120], strides = [1, 1]} : vector<22x144xbf16> to vector<22x120xbf16>
    %30 = vector.extract_strided_slice %7 {offsets = [0, 22], sizes = [22, 120], strides = [1, 1]} : vector<22x144xbf16> to vector<22x120xbf16>
    %31 = vector.extract_strided_slice %7 {offsets = [0, 23], sizes = [22, 120], strides = [1, 1]} : vector<22x144xbf16> to vector<22x120xbf16>
    %32 = vector.extract_strided_slice %7 {offsets = [0, 24], sizes = [22, 120], strides = [1, 1]} : vector<22x144xbf16> to vector<22x120xbf16>
    %33 = tpu.concatenate %8, %9, %10, %11, %12, %13, %14, %15, %16, %17, %18, %19, %20, %21, %22, %23 in 0 : vector<22x120xbf16>, vector<22x120xbf16>, vector<22x120xbf16>, vector<22x120xbf16>, vector<22x120xbf16>, vector<22x120xbf16>, vector<22x120xbf16>, vector<22x120xbf16>, vector<22x120xbf16>, vector<22x120xbf16>, vector<22x120xbf16>, vector<22x120xbf16>, vector<22x120xbf16>, vector<22x120xbf16>, vector<22x120xbf16>, vector<22x120xbf16> -> vector<352x120xbf16>
    %34 = tpu.concatenate %24, %25, %26, %27, %28, %29, %30, %31, %32 in 0 : vector<22x120xbf16>, vector<22x120xbf16>, vector<22x120xbf16>, vector<22x120xbf16>, vector<22x120xbf16>, vector<22x120xbf16>, vector<22x120xbf16>, vector<22x120xbf16>, vector<22x120xbf16> -> vector<198x120xbf16>
    %35 = tpu.concatenate %33, %34 in 0 : vector<352x120xbf16>, vector<198x120xbf16> -> vector<550x120xbf16>
    %cst = arith.constant dense<0.000000e+00> : vector<40x120xf32>
    %36 = tpu.matmul %0, %35, %cst {dimension_numbers = #tpu.dot_dimension_numbers<[1], [0], [0], [1], [0, 0, 1, 1], [], []>} : vector<40x550xbf16>, vector<550x120xbf16>, vector<40x120xf32> -> vector<40x120xf32>
    %37 = vector.broadcast %1 : vector<40x1xf32> to vector<40x120xf32>
    %38 = arith.addf %36, %37 : vector<40x120xf32>
    %cst_12 = arith.constant 0.000000e+00 : f32
    %39 = vector.broadcast %cst_12 : f32 to vector<40x120xf32>
    %40 = arith.cmpf ogt, %38, %39 : vector<40x120xf32>
    %41 = math.exp %38 : vector<40x120xf32>
    %cst_13 = arith.constant 1.000000e+00 : f32
    %42 = vector.broadcast %cst_13 : f32 to vector<40x120xf32>
    %43 = arith.subf %41, %42 : vector<40x120xf32>
    %44 = arith.select %40, %38, %43 : vector<40x120xi1>, vector<40x120xf32>
    %cst_14 = arith.constant dense<0.000000e+00> : vector<4x40xf32>
    %45 = tpu.matmul %2, %44, %cst_14 {dimension_numbers = #tpu.dot_dimension_numbers<[1], [1], [0], [0], [0, 0, 1, 0], [], []>} : vector<4x120xf32>, vector<40x120xf32>, vector<4x40xf32> -> vector<4x40xf32>
    %cst_15 = arith.constant dense<0.000000e+00> : vector<4x40xf32>
    %46 = tpu.matmul %45, %3, %cst_15 {dimension_numbers = #tpu.dot_dimension_numbers<[1], [0], [0], [1], [0, 0, 1, 1], [], []>} : vector<4x40xf32>, vector<40x40xf32>, vector<4x40xf32> -> vector<4x40xf32>
    %47 = vector.broadcast %4 : vector<1x40xf32> to vector<4x40xf32>
    %48 = arith.addf %46, %47 : vector<4x40xf32>
    %c0_16 = arith.constant 0 : index
    %c0_17 = arith.constant 0 : index
    %c0_18 = arith.constant 0 : index
    %49 = vector.load %arg7[%c0_16, %c0_17, %c0_18] : memref<2x4x40xf32, #tpu.memory_space<vmem>>, vector<1x4x40xf32>
    %50 = vector.shape_cast %49 : vector<1x4x40xf32> to vector<4x40xf32>
    %51 = vector.shape_cast %48 : vector<4x40xf32> to vector<1x4x40xf32>
    tpu.vector_store %arg7[%c0_16, %c0_17, %c0_18], %51 {strides = array<i32>} : memref<2x4x40xf32, #tpu.memory_space<vmem>>, vector<1x4x40xf32>,
    %c1 = arith.constant 1 : index
    %c0_19 = arith.constant 0 : index
    %c0_20 = arith.constant 0 : index
    %52 = vector.load %arg1[%c1, %c0_19, %c0_20] : memref<2x22x144xf32, #tpu.memory_space<vmem>>, vector<1x22x144xf32>
    %53 = vector.shape_cast %52 : vector<1x22x144xf32> to vector<22x144xf32>
    %54 = arith.truncf %53 : vector<22x144xf32> to vector<22x144xbf16>
    %55 = vector.extract_strided_slice %54 {offsets = [0, 0], sizes = [22, 120], strides = [1, 1]} : vector<22x144xbf16> to vector<22x120xbf16>
    %56 = vector.extract_strided_slice %54 {offsets = [0, 1], sizes = [22, 120], strides = [1, 1]} : vector<22x144xbf16> to vector<22x120xbf16>
    %57 = vector.extract_strided_slice %54 {offsets = [0, 2], sizes = [22, 120], strides = [1, 1]} : vector<22x144xbf16> to vector<22x120xbf16>
    %58 = vector.extract_strided_slice %54 {offsets = [0, 3], sizes = [22, 120], strides = [1, 1]} : vector<22x144xbf16> to vector<22x120xbf16>
    %59 = vector.extract_strided_slice %54 {offsets = [0, 4], sizes = [22, 120], strides = [1, 1]} : vector<22x144xbf16> to vector<22x120xbf16>
    %60 = vector.extract_strided_slice %54 {offsets = [0, 5], sizes = [22, 120], strides = [1, 1]} : vector<22x144xbf16> to vector<22x120xbf16>
    %61 = vector.extract_strided_slice %54 {offsets = [0, 6], sizes = [22, 120], strides = [1, 1]} : vector<22x144xbf16> to vector<22x120xbf16>
    %62 = vector.extract_strided_slice %54 {offsets = [0, 7], sizes = [22, 120], strides = [1, 1]} : vector<22x144xbf16> to vector<22x120xbf16>
    %63 = vector.extract_strided_slice %54 {offsets = [0, 8], sizes = [22, 120], strides = [1, 1]} : vector<22x144xbf16> to vector<22x120xbf16>
    %64 = vector.extract_strided_slice %54 {offsets = [0, 9], sizes = [22, 120], strides = [1, 1]} : vector<22x144xbf16> to vector<22x120xbf16>
    %65 = vector.extract_strided_slice %54 {offsets = [0, 10], sizes = [22, 120], strides = [1, 1]} : vector<22x144xbf16> to vector<22x120xbf16>
    %66 = vector.extract_strided_slice %54 {offsets = [0, 11], sizes = [22, 120], strides = [1, 1]} : vector<22x144xbf16> to vector<22x120xbf16>
    %67 = vector.extract_strided_slice %54 {offsets = [0, 12], sizes = [22, 120], strides = [1, 1]} : vector<22x144xbf16> to vector<22x120xbf16>
    %68 = vector.extract_strided_slice %54 {offsets = [0, 13], sizes = [22, 120], strides = [1, 1]} : vector<22x144xbf16> to vector<22x120xbf16>
    %69 = vector.extract_strided_slice %54 {offsets = [0, 14], sizes = [22, 120], strides = [1, 1]} : vector<22x144xbf16> to vector<22x120xbf16>
    %70 = vector.extract_strided_slice %54 {offsets = [0, 15], sizes = [22, 120], strides = [1, 1]} : vector<22x144xbf16> to vector<22x120xbf16>
    %71 = vector.extract_strided_slice %54 {offsets = [0, 16], sizes = [22, 120], strides = [1, 1]} : vector<22x144xbf16> to vector<22x120xbf16>
    %72 = vector.extract_strided_slice %54 {offsets = [0, 17], sizes = [22, 120], strides = [1, 1]} : vector<22x144xbf16> to vector<22x120xbf16>
    %73 = vector.extract_strided_slice %54 {offsets = [0, 18], sizes = [22, 120], strides = [1, 1]} : vector<22x144xbf16> to vector<22x120xbf16>
    %74 = vector.extract_strided_slice %54 {offsets = [0, 19], sizes = [22, 120], strides = [1, 1]} : vector<22x144xbf16> to vector<22x120xbf16>
    %75 = vector.extract_strided_slice %54 {offsets = [0, 20], sizes = [22, 120], strides = [1, 1]} : vector<22x144xbf16> to vector<22x120xbf16>
    %76 = vector.extract_strided_slice %54 {offsets = [0, 21], sizes = [22, 120], strides = [1, 1]} : vector<22x144xbf16> to vector<22x120xbf16>
    %77 = vector.extract_strided_slice %54 {offsets = [0, 22], sizes = [22, 120], strides = [1, 1]} : vector<22x144xbf16> to vector<22x120xbf16>
    %78 = vector.extract_strided_slice %54 {offsets = [0, 23], sizes = [22, 120], strides = [1, 1]} : vector<22x144xbf16> to vector<22x120xbf16>
    %79 = vector.extract_strided_slice %54 {offsets = [0, 24], sizes = [22, 120], strides = [1, 1]} : vector<22x144xbf16> to vector<22x120xbf16>
    %80 = tpu.concatenate %55, %56, %57, %58, %59, %60, %61, %62, %63, %64, %65, %66, %67, %68, %69, %70 in 0 : vector<22x120xbf16>, vector<22x120xbf16>, vector<22x120xbf16>, vector<22x120xbf16>, vector<22x120xbf16>, vector<22x120xbf16>, vector<22x120xbf16>, vector<22x120xbf16>, vector<22x120xbf16>, vector<22x120xbf16>, vector<22x120xbf16>, vector<22x120xbf16>, vector<22x120xbf16>, vector<22x120xbf16>, vector<22x120xbf16>, vector<22x120xbf16> -> vector<352x120xbf16>
    %81 = tpu.concatenate %71, %72, %73, %74, %75, %76, %77, %78, %79 in 0 : vector<22x120xbf16>, vector<22x120xbf16>, vector<22x120xbf16>, vector<22x120xbf16>, vector<22x120xbf16>, vector<22x120xbf16>, vector<22x120xbf16>, vector<22x120xbf16>, vector<22x120xbf16> -> vector<198x120xbf16>
    %82 = tpu.concatenate %80, %81 in 0 : vector<352x120xbf16>, vector<198x120xbf16> -> vector<550x120xbf16>
    %cst_21 = arith.constant dense<0.000000e+00> : vector<40x120xf32>
    %83 = tpu.matmul %0, %82, %cst_21 {dimension_numbers = #tpu.dot_dimension_numbers<[1], [0], [0], [1], [0, 0, 1, 1], [], []>} : vector<40x550xbf16>, vector<550x120xbf16>, vector<40x120xf32> -> vector<40x120xf32>
    %84 = vector.broadcast %1 : vector<40x1xf32> to vector<40x120xf32>
    %85 = arith.addf %83, %84 : vector<40x120xf32>
    %cst_22 = arith.constant 0.000000e+00 : f32
    %86 = vector.broadcast %cst_22 : f32 to vector<40x120xf32>
    %87 = arith.cmpf ogt, %85, %86 : vector<40x120xf32>
    %88 = math.exp %85 : vector<40x120xf32>
    %cst_23 = arith.constant 1.000000e+00 : f32
    %89 = vector.broadcast %cst_23 : f32 to vector<40x120xf32>
    %90 = arith.subf %88, %89 : vector<40x120xf32>
    %91 = arith.select %87, %85, %90 : vector<40x120xi1>, vector<40x120xf32>
    %cst_24 = arith.constant dense<0.000000e+00> : vector<4x40xf32>
    %92 = tpu.matmul %2, %91, %cst_24 {dimension_numbers = #tpu.dot_dimension_numbers<[1], [1], [0], [0], [0, 0, 1, 0], [], []>} : vector<4x120xf32>, vector<40x120xf32>, vector<4x40xf32> -> vector<4x40xf32>
    %cst_25 = arith.constant dense<0.000000e+00> : vector<4x40xf32>
    %93 = tpu.matmul %92, %3, %cst_25 {dimension_numbers = #tpu.dot_dimension_numbers<[1], [0], [0], [1], [0, 0, 1, 1], [], []>} : vector<4x40xf32>, vector<40x40xf32>, vector<4x40xf32> -> vector<4x40xf32>
    %94 = vector.broadcast %4 : vector<1x40xf32> to vector<4x40xf32>
    %95 = arith.addf %93, %94 : vector<4x40xf32>
    %c1_26 = arith.constant 1 : index
    %c0_27 = arith.constant 0 : index
    %c0_28 = arith.constant 0 : index
    %96 = vector.load %arg7[%c1_26, %c0_27, %c0_28] : memref<2x4x40xf32, #tpu.memory_space<vmem>>, vector<1x4x40xf32>
    %97 = vector.shape_cast %96 : vector<1x4x40xf32> to vector<4x40xf32>
    %98 = vector.shape_cast %95 : vector<4x40xf32> to vector<1x4x40xf32>
    tpu.vector_store %arg7[%c1_26, %c0_27, %c0_28], %98 {strides = array<i32>} : memref<2x4x40xf32, #tpu.memory_space<vmem>>, vector<1x4x40xf32>,
    return
  }
  func.func @transform_0(%arg0: i32) -> (i32, i32, i32) {
    %c0_i32 = arith.constant 0 : i32
    %c0_i32_0 = arith.constant 0 : i32
    %c0_i32_1 = arith.constant 0 : i32
    return %arg0, %c0_i32, %c0_i32_0 : i32, i32, i32
  }
  func.func @transform_1(%arg0: i32) -> (i32, i32) {
    %c0_i32 = arith.constant 0 : i32
    %c0_i32_0 = arith.constant 0 : i32
    %c0_i32_1 = arith.constant 0 : i32
    return %c0_i32, %c0_i32_0 : i32, i32
  }
  func.func @transform_2(%arg0: i32) -> (i32, i32) {
    %c0_i32 = arith.constant 0 : i32
    %c0_i32_0 = arith.constant 0 : i32
    %c0_i32_1 = arith.constant 0 : i32
    return %c0_i32, %c0_i32_0 : i32, i32
  }
  func.func @transform_3(%arg0: i32) -> (i32, i32) {
    %c0_i32 = arith.constant 0 : i32
    %c0_i32_0 = arith.constant 0 : i32
    %c0_i32_1 = arith.constant 0 : i32
    return %c0_i32, %c0_i32_0 : i32, i32
  }
  func.func @transform_4(%arg0: i32) -> (i32, i32) {
    %c0_i32 = arith.constant 0 : i32
    %c0_i32_0 = arith.constant 0 : i32
    %c0_i32_1 = arith.constant 0 : i32
    return %c0_i32, %c0_i32_0 : i32, i32
  }
  func.func @transform_5(%arg0: i32) -> (i32, i32) {
    %c0_i32 = arith.constant 0 : i32
    %c0_i32_0 = arith.constant 0 : i32
    %c0_i32_1 = arith.constant 0 : i32
    return %c0_i32, %c0_i32_0 : i32, i32
  }
  func.func @transform_6(%arg0: i32) -> (i32, i32, i32) {
    %c0_i32 = arith.constant 0 : i32
    %c0_i32_0 = arith.constant 0 : i32
    %c0_i32_1 = arith.constant 0 : i32
    return %arg0, %c0_i32, %c0_i32_0 : i32, i32, i32
  }
}

</mosaic_0001>

<bundles_post_ra>
// kernel: tpu_custom_call.1
= control target key start
LH: loop header
LB: loop body
LE: loop exit
PB: predicated region body
PF: predicated region fallthrough
CT: control target
= control target key end

     0   :  { %11 = vsyncpa [#allocation3], 0  ;;  %s3951_s0 = inlined_call_operand.vmem [shape: f32[4,22,144], index: 0, kind: input, shape index: {}]   ;;  %s3952_s1 = inlined_call_operand.vmem [shape: bf16[40,550], index: 1, kind: input, shape index: {}]   ;;  %s3953_s2 = inlined_call_operand.vmem [shape: f32[40,1], index: 2, kind: input, shape index: {}]   ;;  %s3954_s3 = inlined_call_operand.vmem [shape: f32[4,120], index: 3, kind: input, shape index: {}]   ;;  %s3955_s4 = inlined_call_operand.vmem [shape: f32[40,40], index: 4, kind: input, shape index: {}]   ;;  %s3956_s5 = inlined_call_operand.vmem [shape: f32[1,40], index: 5, kind: input, shape index: {}]   ;;  %s3957_s6 = inlined_call_operand.hbm [shape: f32[4,4,40], index: 6, kind: output, shape index: {}]  }
   0x1   :  { %13 = vsyncpa [#allocation3 + $0x1], 0  ;;  %s2606_s21 = smov 0   ;;  %s2608_s22 = smov 0  }
   0x2   :  { %s2610_s23 = smov 0   ;;  %s2612_s24 = smov 0  }
   0x3 LB: > { %s2627_s25 = sadd.s32 4294967295, %s2547_s24   ;;  %s2058_s26 = sadd.s32 4294967294, %s2547_s24   ;;  %s2547_s24 = sphi %s2612_s24, %s4078_s24   ;;  %s2543_s23 = sphi %s2610_s23, %s4077_s23   ;;  %s2539_s22 = sphi %s2608_s22, %s4076_s22   ;;  %s2535_s21 = sphi %s2606_s21, %s4075_s21  }
   0x4   : > { %s2631_s27 = sadd.s32 1, %s2547_s24   ;;  %s157_s28 = sadd.s32 1, %s2543_s23 }
   0x5   : > { %s154_s29 = ssub.s32 %s2547_s24, %s2631_s27  ;;  %p167_p0 = scmp.ne.s32.totalorder %s2543_s23, %s2539_s22 }
   0x6   : > { %p155_p1 = scmp.eq.s32.totalorder %s154_s29, 0  ;;  %p168_p2 = scmp.eq.s32.totalorder %s2627_s25, 1 }
   0x7   : > { %p173_p3 = scmp.ne.s32.totalorder %s2539_s22, %s2535_s21  ;;  %p174_p4 = scmp.eq.s32.totalorder %s2058_s26, 1 }
   0x8   : > { %s2642_s30 = scalar_select %p155_p1, %s2543_s23, %s157_s28  }
   0x9   : > { %p2644_p5 = por %p168_p2, %p167_p0  ;;  %p2648_p6 = por %p174_p4, %p173_p3 }
   0xa   : > { %p2061_p7 = scmp.ge.s32.totalorder %s2547_s24, 1  ;;  %p217_p8 = scmp.lt.s32.totalorder %s2547_s24, 3 }
   0xc   : > { %p218_p9 = pnand %p2061_p7, %p217_p8 }
   0xe   : > { %221 = sbr.rel (%p218_p9) target bundleno = 1483 (0x5cb), region = 44 }
  0x13   : > { %s2063_s9 = sshll.u32 %s2627_s25, 1  ;;  %s2549_s14 = smov 121   ;;  %vm342_vm0 = vcmask 1041408   ;;  %vm331_vm1 = vcmask 1046528   ;;  %vm323_vm2 = vcmask 1043456   ;;  %vm3974_vm3 = vcmask 1040384  }
  0x14   : > { %p249_p10 = scmp.lt.s32.totalorder %s2063_s9, 3  ;;  %s2550_s15 = smov 127   ;;  %vm3976_vm4 = vcmask 1045504   ;;  %vm296_vm5 = vcmask 1042432   ;;  %vm350_vm6 = vcmask 1044480   ;;  %v2559_v52 = vmov 0  }
  0x15   : > { %s2551_s16 = smov 122   ;;  %s2552_s17 = smov 123   ;;  %2445 = vset.pattern.permute.xlu0 %v2559_v52  ;;  %2446 = vset.pattern.permute.xlu1 %v2559_v52  ;;  %vm544_vm7 = vcmask 1039360   ;;  %vm577_vm8 = vcmask 1006592   ;;  %vm585_vm9 = vcmask 998400   ;;  %vm592_vm10 = vcmask 990208  }
  0x16   : > { %s4080_s9 = smov (!%p249_p10, %s2063_s9), 3  ;;  %s2553_s18 = smov 124   ;;  %vm568_vm11 = vcmask 1014784   ;;  %vm3966_vm12 = vcmask 1022976   ;;  %vm3967_vm13 = vcmask 1031168   ;;  %vm3975_vm14 = vcmask 982016  }
  0x17   : > { %s2384_s10 = smul.u32 48, %s4080_s9  ;;  %s2554_s19 = smov 125   ;;  %vm3973_vm15 = vcmask 965632  }
  0x18   : > { %s2555_s20 = smov 126   ;;  %s2556_s26 = smov 120  }
  0x19   : > { %s2658_s13 = scalar_lea.vmem %s3951_s0, %s2384_s10  ;;  %s2557_s28 = smov 118  }
  0x1a   : > { %v285_v0 = vld [vmem:[%s2658_s13 + $0x8] sm:$0xff]  ;;  %v287_v1 = vld [vmem:[%s2658_s13 + $0x18] sm:$0xff]  ;;  %v284_v2 = vld [vmem:[%s2658_s13] sm:$0xff]  ;;  %s3970_s29 = smov 117   ;;  %s3962_s9 = smov 119  }
  0x1b   : > { %v2663_v3 = vpack.c.bf16 %v287_v1, %v285_v0  ;;  %v286_v4 = vld [vmem:[%s2658_s13 + $0x10] sm:$0xff]  ;;  %v288_v7 = vld [vmem:[%s2658_s13 + $0x20] sm:$0x3f]  ;;  %v289_v8 = vld [vmem:[%s2658_s13 + $0x28] sm:$0x3f]  ;;  %s2561_s10 = smov 112  }
  0x1c   : > { %v2666_v5 = vpack.c.bf16 %v286_v4, %v284_v2  ;;  %v2686_v12 = vpack.c.bf16 %v288_v7, %v288_v7  ;;  %v2688_v13 = vpack.c.bf16 %v289_v8, %v289_v8  ;;  %s3958_s11 = smov 113   ;;  %s3960_s12 = smov 114  }
  0x1d   : > { %v2669_v6 = vrot.slane %v2663_v3, 3  ;;  %v2679_v10 = vrot.slane %v2663_v3, 5  ;;  %v2701_v16 = vrot.slane %v2663_v3, 6  ;;  %v2725_v22 = vrot.slane %v2663_v3, 1 }
  0x1e   : > { %v2674_v9 = vrot.slane %v2666_v5, 3  ;;  %v2684_v11 = vrot.slane %v2666_v5, 5  ;;  %v2693_v14 = vrot.slane %v2666_v5, 6  ;;  %v2698_v15 = vrot.slane %v2686_v12, 1 }
  0x1f   : > { %588 = vrot.lane.b32.xlu1 %v2669_v6, %s2549_s14  ;;  %v449_v17 = vrot.slane %v2688_v13, 6  ;;  %v344_v18 = vrot.slane %v2686_v12, 6  ;;  %v2722_v21 = vrot.slane %v2688_v13, 1  ;;  %v2728_v23 = vrot.slane %v2666_v5, 1 }
  0x20   : > { %354 = vrot.lane.b32.xlu0 %v2674_v9, %s2549_s14  ;;  %v2745_v26 = vrot.slane %v2666_v5, 4  ;;  %v325_v27 = vrot.slane %v2686_v12, 4  ;;  %v2757_v29 = vrot.slane %v2663_v3, 4  ;;  %v415_v30 = vrot.slane %v2688_v13, 4 }
  0x21   : > { %v2711_v19 = vsel %vm342_vm0, %v2701_v16, %v449_v17  ;;  %v2715_v20 = vsel %vm342_vm0, %v2693_v14, %v344_v18  ;;  %v2737_v24 = vsel %vm331_vm1, %v2725_v22, %v2722_v21  ;;  %v2742_v25 = vsel %vm331_vm1, %v2728_v23, %v2698_v15 }
  0x22   : > { %v2754_v28 = vsel %vm323_vm2, %v2745_v26, %v325_v27  ;;  %v2766_v31 = vsel %vm323_vm2, %v2757_v29, %v415_v30  ;;  %v316_v32 = vrot.slane %v2666_v5, 7  ;;  %v317_v33 = vrot.slane %v2686_v12, 7 }
  0x23   : > { %540 = vrot.lane.b32.xlu1 %v2679_v10, %s2550_s15  ;;  %v400_v35 = vrot.slane %v2663_v3, 7  ;;  %v401_v36 = vrot.slane %v2688_v13, 7  ;;  %v306_v38 = vrot.slane %v2686_v12, 2  ;;  %v381_v39 = vrot.slane %v2688_v13, 2 }
  0x24   : > { %300 = vrot.lane.b32.xlu0 %v2684_v11, %s2550_s15  ;;  %v2775_v34 = vsel %vm3974_vm3, %v316_v32, %v317_v33  ;;  %v380_v40 = vrot.slane %v2663_v3, 2  ;;  %v305_v41 = vrot.slane %v2666_v5, 2  ;;  %v298_v44 = vrot.slane %v2686_v12, 5 }
  0x25   : > { %v2784_v37 = vsel %vm3974_vm3, %v400_v35, %v401_v36  ;;  %v367_v46 = vrot.slane %v2688_v13, 5  ;;  %v463_v48 = vrot.slane %v2688_v13, 3  ;;  %v352_v49 = vrot.slane %v2686_v12, 3 }
  0x26   : > { %v382_v42 = vsel %vm3976_vm4, %v380_v40, %v381_v39  ;;  %v307_v43 = vsel %vm3976_vm4, %v305_v41, %v306_v38  ;;  %v299_v45 = vsel %vm296_vm5, %v2684_v11, %v298_v44 }
  0x27   : > { %346 = vrot.lane.b32.xlu1 %v2693_v14, %s2551_s16  ;;  %v368_v47 = vsel %vm296_vm5, %v2679_v10, %v367_v46  ;;  %v464_v50 = vsel %vm350_vm6, %v2669_v6, %v463_v48  ;;  %v353_v51 = vsel %vm350_vm6, %v2674_v9, %v352_v49  ;;  %v2940_v48 = vld [vmem:[%s3952_s1 + $0x4] ss:$20 sps:$4 sm:$0xff]  }
  0x28   : > { %339 = vrot.lane.b32.xlu0 %v2698_v15, %s2552_s17  ;;  %872 = vmatprep.mubr.bf16.mxu0 %v2940_v48 }
  0x2b   : > { %583 = vrot.lane.b32.xlu1 %v2711_v19, %s2551_s16 }
  0x2c   : > { %348 = vrot.lane.b32.xlu0 %v2715_v20, %s2551_s16 }
  0x2f   : > { %581 = vrot.lane.b32.xlu1 %v2701_v16, %s2551_s16 }
  0x30   : > { %575 = vrot.lane.b32.xlu0 %v2722_v21, %s2552_s17 }
  0x33   : > { %573 = vrot.lane.b32.xlu1 %v2737_v24, %s2552_s17 }
  0x34   : > { %337 = vrot.lane.b32.xlu0 %v2742_v25, %s2552_s17 }
  0x37   : > { %335 = vrot.lane.b32.xlu1 %v2728_v23, %s2552_s17 }
  0x38   : > { %329 = vrot.lane.b32.xlu0 %v2754_v28, %s2553_s18 }
  0x3b   : > { %571 = vrot.lane.b32.xlu1 %v2725_v22, %s2552_s17 }
  0x3c   : > { %566 = vrot.lane.b32.xlu0 %v2766_v31, %s2553_s18 }
  0x3f   : > { %327 = vrot.lane.b32.xlu1 %v2745_v26, %s2553_s18 }
  0x40   : > { %321 = vrot.lane.b32.xlu0 %v2775_v34, %s2554_s19 }
  0x43   : > { %564 = vrot.lane.b32.xlu1 %v2757_v29, %s2553_s18 }
  0x44   : > { %559 = vrot.lane.b32.xlu0 %v2784_v37, %s2554_s19 }
  0x47   : > { %319 = vrot.lane.b32.xlu1 %v316_v32, %s2554_s19 }
  0x48   : > { %312 = vrot.lane.b32.xlu0 %v306_v38, %s2555_s20 }
  0x4b   : > { %557 = vrot.lane.b32.xlu1 %v400_v35, %s2554_s19 }
  0x4c   : > { %551 = vrot.lane.b32.xlu0 %v381_v39, %s2555_s20 }
  0x4f   : > { %549 = vrot.lane.b32.xlu1 %v382_v42, %s2555_s20 }
  0x50   : > { %310 = vrot.lane.b32.xlu0 %v307_v43, %s2555_s20 }
  0x53   : > { %597 = vrot.lane.b32.xlu1 %v2688_v13, %s2556_s26 }
  0x54   : > { %361 = vrot.lane.b32.xlu0 %v2686_v12, %s2556_s26 }
  0x57   : > { %308 = vrot.lane.b32.xlu1 %v305_v41, %s2555_s20 }
  0x58   : > { %302 = vrot.lane.b32.xlu0 %v299_v45, %s2550_s15 }
  0x5b   : > { %547 = vrot.lane.b32.xlu1 %v380_v40, %s2555_s20 }
  0x5c   : > { %542 = vrot.lane.b32.xlu0 %v368_v47, %s2550_s15 }
  0x5f   : > { %595 = vrot.lane.b32.xlu1 %v2663_v3, %s2556_s26 }
  0x60   : > { %359 = vrot.lane.b32.xlu0 %v2666_v5, %s2556_s26 }
  0x63   : > { %590 = vrot.lane.b32.xlu1 %v464_v50, %s2549_s14 }
  0x64   : > { %356 = vrot.lane.b32.xlu0 %v353_v51, %s2549_s14 }
  0x67   : > { %393 = vrot.lane.b32.xlu1 %v381_v39, %s2557_s28 }
  0x68   : > { %391 = vrot.lane.b32.xlu0 %v306_v38, %s2557_s28 }
  0x6b   : > { %405 = vrot.lane.b32.xlu1 %v400_v35, %s3970_s29 }
  0x6c   : > { %403 = vrot.lane.b32.xlu0 %v316_v32, %s3970_s29 }
  0x6f   : > { %389 = vrot.lane.b32.xlu1 %v382_v42, %s2557_s28 }
  0x70   : > { %387 = vrot.lane.b32.xlu0 %v307_v43, %s2557_s28 }
  0x73   : > { %375 = vrot.lane.b32.xlu1 %v368_v47, %s3962_s9 }
  0x74   : > { %373 = vrot.lane.b32.xlu0 %v299_v45, %s3962_s9 }
  0x77   : > { %385 = vrot.lane.b32.xlu1 %v380_v40, %s2557_s28 }
  0x78   : > { %383 = vrot.lane.b32.xlu0 %v305_v41, %s2557_s28 }
  0x7b   : > { %371 = vrot.lane.b32.xlu1 %v2679_v10, %s3962_s9 }
  0x7c   : > { %369 = vrot.lane.b32.xlu0 %v2684_v11, %s3962_s9  ;;  %s3968_s9 = smov 116  }
  0x7f   : > { %659 = vrot.lane.b32.xlu1 %v2663_v3, %s2561_s10 }
  0x80   : > { %657 = vrot.lane.b32.xlu0 %v2666_v5, %s2561_s10 }
  0x83   : > { %471 = vrot.lane.b32.xlu1 %v464_v50, %s3958_s11 }
  0x84   : > { %469 = vrot.lane.b32.xlu0 %v353_v51, %s3958_s11 }
  0x87   : > { %457 = vrot.lane.b32.xlu1 %v2711_v19, %s3960_s12 }
  0x88   : > { %455 = vrot.lane.b32.xlu0 %v2715_v20, %s3960_s12 }
  0x8b   : > { %467 = vrot.lane.b32.xlu1 %v2669_v6, %s3958_s11 }
  0x8c   : > { %465 = vrot.lane.b32.xlu0 %v2674_v9, %s3958_s11  ;;  %s3964_s11 = smov 115  }
  0x91   : > { %v589_v53 = vpop.permute.xlu1 %588 }
  0x92   : > { %v2856_v54 = vpop.permute.xlu0 %354 }
  0x93   : > { %v593_v17 = vsel %vm592_vm10, %v2856_v54, %v589_v53 }
  0x95   : > { %v541_v55 = vpop.permute.xlu1 %540 }
  0x96   : > { %v2858_v56 = vpop.permute.xlu0 %300  ;;  %v606_v57 = vsel %vm296_vm5, %v2688_v13, %v541_v55 }
  0x97   : > { %v545_v58 = vsel %vm544_vm7, %v2858_v56, %v541_v55  ;;  %663 = vrot.lane.b32.xlu1 %v606_v57, %s2561_s10 }
  0x98   : > { %v603_v59 = vsel %vm296_vm5, %v2686_v12, %v545_v58 }
  0x99   : > { %661 = vrot.lane.b32.xlu0 %v603_v59, %s2561_s10  ;;  %v2868_v60 = vpop.permute.xlu1 %346 }
  0x9a   : > { %v2870_v61 = vpop.permute.xlu0 %339 }
  0x9d   : > { %v584_v62 = vpop.permute.xlu1 %583 }
  0x9e   : > { %v2872_v63 = vpop.permute.xlu0 %348  ;;  %v642_v18 = vsel %vm350_vm6, %v584_v62, %v589_v53 }
  0x9f   : > { %v587_v10 = vsel %vm585_vm9, %v2872_v63, %v584_v62  ;;  %v2457_v62 = vld [vmem:[%s3952_s1 + $0xc] ss:$20 sps:$4 sm:$0xff]  }
  0xa0   : > { %v639_v19 = vsel %vm350_vm6, %v587_v10, %v593_v17  ;;  %928 = vmatprep.mubr.bf16.mxu1 %v2457_v62 }
  0xa1   : > { %v582_v0 = vpop.permute.xlu1 %581 }
  0xa2   : > { %v586_v1 = vsel %vm585_vm9, %v2868_v60, %v582_v0  ;;  %v576_v2 = vpop.permute.xlu0 %575 }
  0xa3   : > { %v580_v3 = vsel %vm577_vm8, %v2870_v61, %v576_v2  ;;  %v636_v4 = vsel %vm342_vm0, %v576_v2, %v582_v0 }
  0xa4   : > { %691 = vrot.lane.b32.xlu1 %v636_v4, %s2561_s10  ;;  %v633_v6 = vsel %vm342_vm0, %v580_v3, %v586_v1 }
  0xa5   : > { %689 = vrot.lane.b32.xlu0 %v633_v6, %s2561_s10  ;;  %v574_v7 = vpop.permute.xlu1 %573 }
  0xa6   : > { %v2882_v8 = vpop.permute.xlu0 %337 }
  0xa7   : > { %v579_v9 = vsel %vm577_vm8, %v2882_v8, %v574_v7 }
  0xa8   : > { %687 = vrot.lane.b32.xlu1 %v574_v7, %s2561_s10 }
  0xa9   : > { %685 = vrot.lane.b32.xlu0 %v579_v9, %s2561_s10  ;;  %v2890_v11 = vpop.permute.xlu1 %335 }
  0xaa   : > { %v2892_v13 = vpop.permute.xlu0 %329 }
  0xac   : > { %695 = vrot.lane.b32.xlu1 %v642_v18, %s2561_s10 }
  0xad   : > { %693 = vrot.lane.b32.xlu0 %v639_v19, %s2561_s10  ;;  %v572_v20 = vpop.permute.xlu1 %571 }
  0xae   : > { %v578_v27 = vsel %vm577_vm8, %v2890_v11, %v572_v20  ;;  %v567_v30 = vpop.permute.xlu0 %566 }
  0xaf   : > { %v570_v32 = vsel %vm568_vm11, %v2892_v13, %v567_v30  ;;  %v630_v33 = vsel %vm331_vm1, %v567_v30, %v572_v20  ;;  %v500_v20 = vsel %vm331_vm1, %v2892_v13, %v2890_v11  ;;  %v2096_v30 = vld [vmem:[%s2658_s13 + $0x30] sm:$0xff]  ;;  %v275_v11 = vld [vmem:[%s3953_s2 + $0x18] sm:$0xff] }
  0xb0   : > { %683 = vrot.lane.b32.xlu1 %v630_v33, %s2561_s10  ;;  %v627_v35 = vsel %vm331_vm1, %v570_v32, %v578_v27  ;;  %v2098_v32 = vld [vmem:[%s2658_s13 + $0x40] sm:$0xff]  ;;  %v2100_v33 = vld [vmem:[%s2658_s13 + $0x50] sm:$0x3f] }
  0xb1   : > { %681 = vrot.lane.b32.xlu0 %v627_v35, %s2561_s10  ;;  %v2908_v36 = vpop.permute.xlu1 %327 }
  0xb2   : > { %v2910_v38 = vpop.permute.xlu0 %321 }
  0xb4   : > { %441 = vrot.lane.b32.xlu1 %v2722_v21, %s3964_s11 }
  0xb5   : > { %439 = vrot.lane.b32.xlu0 %v2698_v15, %s3964_s11  ;;  %v565_v39 = vpop.permute.xlu1 %564 }
  0xb6   : > { %v560_v40 = vpop.permute.xlu0 %559  ;;  %v569_v41 = vsel %vm568_vm11, %v2908_v36, %v565_v39 }
  0xb7   : > { %v563_v42 = vsel %vm3966_vm12, %v2910_v38, %v560_v40  ;;  %v624_v15 = vsel %vm323_vm2, %v560_v40, %v565_v39  ;;  %v276_v40 = vld [vmem:[%s3953_s2 + $0x20] sm:$0xff] }
  0xb8   : > { %453 = vrot.lane.b32.xlu1 %v2701_v16, %s3960_s12  ;;  %v621_v44 = vsel %vm323_vm2, %v563_v42, %v569_v41  ;;  %v3023_v41 = vpack.c.bf16 %v2098_v32, %v2096_v30  ;;  %v3025_v42 = vpack.c.bf16 %v2100_v33, %v2100_v33 }
  0xb9   : > { %451 = vrot.lane.b32.xlu0 %v2693_v14, %s3960_s12  ;;  %v2924_v43 = vpop.permute.xlu1 %319 }
  0xba   : > { %v2926_v21 = vpop.permute.xlu0 %312 }
  0xbc   : > { %679 = vrot.lane.b32.xlu1 %v624_v15, %s2561_s10 }
  0xbd   : > { %677 = vrot.lane.b32.xlu0 %v621_v44, %s2561_s10  ;;  %v558_v16 = vpop.permute.xlu1 %557  ;;  %v2097_v44 = vld [vmem:[%s2658_s13 + $0x38] sm:$0xff] }
  0xbe   : > { %v562_v45 = vsel %vm3966_vm12, %v2924_v43, %v558_v16  ;;  %v552_v46 = vpop.permute.xlu0 %551  ;;  %vm411_vm12 = vcmask 957440  }
  0xbf   : > { %v556_v14 = vsel %vm3967_vm13, %v2926_v21, %v552_v46  ;;  %v618_v47 = vsel %vm3974_vm3, %v552_v46, %v558_v16  ;;  %v2099_v16 = vld [vmem:[%s2658_s13 + $0x48] sm:$0xff] }
  0xc0   : > { %675 = vrot.lane.b32.xlu1 %v618_v47, %s2561_s10  ;;  %v615_v49 = vsel %vm3974_vm3, %v556_v14, %v562_v45  ;;  %v2101_v45 = vld [vmem:[%s2658_s13 + $0x58] sm:$0x3f]  ;;  %v495_v47 = vsel %vm323_vm2, %v2910_v38, %v2908_v36 }
  0xc1   : > { %673 = vrot.lane.b32.xlu0 %v615_v49, %s2561_s10  ;;  %v550_v50 = vpop.permute.xlu1 %549  ;;  %v274_v49 = vld [vmem:[%s3953_s2 + $0x10] sm:$0xff] }
  0xc2   : > { %v2946_v51 = vpop.permute.xlu0 %310 }
  0xc3   : > { %v555_v58 = vsel %vm3967_vm13, %v2946_v51, %v550_v50 }
  0xc4   : > { %437 = vrot.lane.b32.xlu1 %v2737_v24, %s3964_s11 }
  0xc5   : > { %435 = vrot.lane.b32.xlu0 %v2742_v25, %s3964_s11  ;;  %v598_v52 = vpop.permute.xlu1 %597 }
  0xc6   : > { %v2952_v53 = vpop.permute.xlu0 %361 }
  0xc7   : > { %v601_v59 = vsel %vm3975_vm14, %v2952_v53, %v598_v52 }
  0xc8   : > { %423 = vrot.lane.b32.xlu1 %v2766_v31, %s3968_s9 }
  0xc9   : > { %421 = vrot.lane.b32.xlu0 %v2754_v28, %s3968_s9  ;;  %v2958_v55 = vpop.permute.xlu1 %308 }
  0xca   : > { %v2960_v57 = vpop.permute.xlu0 %302 }
  0xcc   : > { %433 = vrot.lane.b32.xlu1 %v2725_v22, %s3964_s11 }
  0xcd   : > { %431 = vrot.lane.b32.xlu0 %v2728_v23, %s3964_s11  ;;  %v548_v24 = vpop.permute.xlu1 %547 }
  0xce   : > { %v543_v25 = vpop.permute.xlu0 %542  ;;  %v554_v2 = vsel %vm3967_vm13, %v2958_v55, %v548_v24  ;;  %vm3972_vm13 = vcmask 973824  }
  0xcf   : > { %v546_v3 = vsel %vm544_vm7, %v2960_v57, %v543_v25 }
  0xd0   : > { %671 = vrot.lane.b32.xlu1 %v550_v50, %s2561_s10 }
  0xd1   : > { %669 = vrot.lane.b32.xlu0 %v555_v58, %s2561_s10  ;;  %v596_v28 = vpop.permute.xlu1 %595  ;;  %v3045_v58 = vpack.c.bf16 %v2099_v16, %v2097_v44 }
  0xd2   : > { %v2970_v31 = vpop.permute.xlu0 %359 }
  0xd3   : > { %v600_v17 = vsel %vm3975_vm14, %v2970_v31, %v596_v28  ;;  %vm3977_vm14 = vcmask 932864  }
  0xd4   : > { %707 = vrot.lane.b32.xlu1 %v598_v52, %s2561_s10  ;;  %v273_v52 = vld [vmem:[%s3953_s2 + $0x8] sm:$0xff] }
  0xd5   : > { %705 = vrot.lane.b32.xlu0 %v601_v59, %s2561_s10  ;;  %v591_v22 = vpop.permute.xlu1 %590  ;;  %v490_v59 = vsel %vm3974_vm3, %v2926_v21, %v2924_v43  ;;  %v3068_v43 = vrot.slane %v3023_v41, 3 }
  0xd6   : > { %v2976_v23 = vpop.permute.xlu0 %356 }
  0xd7   : > { %v594_v27 = vsel %vm592_vm10, %v2976_v23, %v591_v22 }
  0xd8   : > { %409 = vrot.lane.b32.xlu1 %v2784_v37, %s3970_s29 }
  0xd9   : > { %407 = vrot.lane.b32.xlu0 %v2775_v34, %s3970_s29  ;;  %v394_v0 = vpop.permute.xlu1 %393  ;;  %v612_v34 = vsel %vm3976_vm4, %v543_v25, %v548_v24  ;;  %v3042_v24 = vrot.slane %v3023_v41, 6  ;;  %v1259_v25 = vrot.slane %v3025_v42, 6  ;;  %s2123_s29 = sshll.u32 %s2627_s25, 7 }
  0xda   : > { %v392_v1 = vpop.permute.xlu0 %391  ;;  %s3904_s12 = scalar_lea.hbm %s3957_s6, %s2123_s29 }
  0xdb   : > { %v398_v4 = vsel %vm3973_vm15, %v392_v1, %v394_v0  ;;  %v3060_v62 = vsel %vm342_vm0, %v3042_v24, %v1259_v25  ;;  %v3063_v0 = vrot.slane %v3045_v58, 6  ;;  %v485_v1 = vsel %vm3976_vm4, %v2960_v57, %v2958_v55 }
  0xdc   : > { %419 = vrot.lane.b32.xlu1 %v2757_v29, %s3968_s9  ;;  %v609_v29 = vsel %vm3976_vm4, %v546_v3, %v554_v2  ;;  %v3101_v55 = vrot.slane %v3045_v58, 5  ;;  %v480_v57 = vsel %vm296_vm5, %v2686_v12, %v2858_v56  ;;  %v3128_v56 = vld [vmem:[%s3952_s1] ss:$20 sps:$4 sm:$0xff]  }
  0xdd   : > { %417 = vrot.lane.b32.xlu0 %v2745_v26, %s3968_s9  ;;  %v406_v37 = vpop.permute.xlu1 %405 }
  0xde   : > { %v404_v6 = vpop.permute.xlu0 %403 }
  0xdf   : > { %v412_v7 = vsel %vm411_vm12, %v404_v6, %v406_v37  ;;  %v3145_v6 = vrot.slane %v3045_v58, 1 }
  0xe0   : > { %667 = vrot.lane.b32.xlu1 %v612_v34, %s2561_s10  ;;  %v522_v9 = vsel %vm3974_vm3, %v398_v4, %v412_v7  ;;  %v3109_v4 = vrot.slane %v3025_v42, 1  ;;  %v3979_v34 = vmov 0.0  }
  0xe1   : > { %665 = vrot.lane.b32.xlu0 %v609_v29, %s2561_s10  ;;  %2124 = vmatprep.subr.bf16.mxu0 %v522_v9  ;;  %v390_v10 = vpop.permute.xlu1 %389  ;;  %v3156_v29 = vrot.slane %v3023_v41, 4  ;;  %v1242_v9 = vrot.slane %v3025_v42, 4 }
  0xe2   : > { %2125 = vmatpush3.bf16.msra.mxu0 %v2882_v8  ;;  %v388_v26 = vpop.permute.xlu0 %387 }
  0xe3   : > { %v397_v18 = vsel %vm3973_vm15, %v388_v26, %v390_v10  ;;  %3998 = vst [vmem:[#allocation5_spill] sm:$0xff] %v3156_v29  ;;  %v269_v26 = vld [vmem:[%s3952_s1 + $0x50] sm:$0xff] }
  0xe4   : > { %703 = vrot.lane.b32.xlu1 %v596_v28, %s2561_s10  ;;  %2126 = vmatprep.subr.bf16.mxu0 %v397_v18  ;;  %v3047_v28 = vpack.c.bf16 %v2101_v45, %v2101_v45  ;;  %v3177_v18 = vld [vmem:[%s3952_s1 + $0x28] ss:$20 sps:$4 sm:$0xff]  }
  0xe5   : > { %701 = vrot.lane.b32.xlu0 %v600_v17, %s2561_s10  ;;  %v376_v19 = vpop.permute.xlu1 %375 }
  0xe6   : > { %2127 = vmatpush3.bf16.msra.mxu0 %v500_v20  ;;  %v374_v8 = vpop.permute.xlu0 %373  ;;  %v3123_v12 = vrot.slane %v3047_v28, 1  ;;  %v3184_v20 = vrot.slane %v3045_v58, 4  ;;  %v1313_v44 = vrot.slane %v3047_v28, 7 }
  0xe7   : > { %v379_v35 = vsel %vm3972_vm13, %v374_v8, %v376_v19  ;;  %v3181_v19 = vsel %vm323_vm2, %v3156_v29, %v1242_v9  ;;  %v1326_v8 = vrot.slane %v3047_v28, 4 }
  0xe8   : > { %699 = vrot.lane.b32.xlu1 %v591_v22, %s2561_s10  ;;  %v272_v22 = vld [vmem:[%s3953_s2] sm:$0xff]  ;;  %v3170_v17 = vsel %vm331_vm1, %v3145_v6, %v3123_v12 }
  0xe9   : > { %697 = vrot.lane.b32.xlu0 %v594_v27, %s2561_s10  ;;  %v386_v39 = vpop.permute.xlu1 %385  ;;  %v3187_v27 = vcombine.high %v269_v26, %v269_v26  ;;  %v3200_v33 = vsel %vm323_vm2, %v3184_v20, %v1326_v8  ;;  %v1218_v8 = vrot.slane %v3025_v42, 5 }
  0xea   : > { %v384_v13 = vpop.permute.xlu0 %383 }
  0xeb   : > { %v396_v15 = vsel %vm3973_vm15, %v384_v13, %v386_v39  ;;  %v1235_v39 = vrot.slane %v3025_v42, 7  ;;  %vm709_vm15 = vcmask 916480  }
  0xec   : > { %752 = vperm.xlu1 %2446, %v275_v11   ;;  %v518_v46 = vsel %vm3976_vm4, %v379_v35, %v396_v15  ;;  %v3203_v35 = vrot.slane %v3023_v41, 7  ;;  %v3211_v11 = vcombine.low %v269_v26, %v269_v26  ;;  %v3218_v15 = vrot.slane %v3045_v58, 7 }
  0xed   : > { %2128 = vmatprep.subr.bf16.mxu0 %v518_v46  ;;  %v372_v14 = vpop.permute.xlu1 %371  ;;  %757 = vperm.xlu0 %2445, %v276_v40  }
  0xee   : > { %2129 = vmatpush3.bf16.msra.mxu0 %v495_v47  ;;  %v370_v50 = vpop.permute.xlu0 %369  ;;  %v3215_v40 = vsel %vm3974_vm3, %v3203_v35, %v1235_v39  ;;  %v3228_v46 = vsel %vm3974_vm3, %v3218_v15, %v1313_v44  ;;  %v3237_v47 = vrot.slane %v3025_v42, 2  ;;  %vm473_vm3 = vcmask 924672  }
  0xef   : > { %v378_v36 = vsel %vm3972_vm13, %v370_v50, %v372_v14  ;;  %3999 = vst [vmem:[#allocation6_spill] sm:$0xff] %v3215_v40  ;;  %vm2567_vm13 = vmmov 0  }
  0xf0   : > { %747 = vperm.xlu1 %2446, %v274_v49   ;;  %v514_v38 = vsel %vm296_vm5, %v2952_v53, %v378_v36  ;;  %v1358_v53 = vrot.slane %v3047_v28, 6  ;;  %v3247_v36 = vrot.slane %v3023_v41, 2 }
  0xf1   : > { %2130 = vmatprep.subr.bf16.mxu0 %v514_v38  ;;  %742 = vperm.xlu0 %2445, %v273_v52   ;;  %v3091_v2 = vpop.permute.xlu1 %659  ;;  %v3244_v52 = vrot.slane %v3047_v28, 2 }
  0xf2   : > { %2131 = vmatpush3.bf16.msra.mxu0 %v490_v59  ;;  %v3075_v21 = vsel %vm342_vm0, %v3063_v0, %v1358_v53  ;;  %v3096_v3 = vpop.permute.xlu0 %657  ;;  %v3256_v53 = vrot.slane %v3045_v58, 2 }
  0xf3   : > { %2132 = vmatprep.subr.bf16.mxu0 %v2970_v31  ;;  %v3081_v31 = vrot.slane %v3045_v58, 3  ;;  %v710_v9 = vsel %vm709_vm15, %v3096_v3, %v3091_v2 }
  0xf4   : > { %737 = vperm.xlu1 %2446, %v272_v22   ;;  %v3272_v26 = vsel %vm3976_vm4, %v3256_v53, %v3244_v52 }
  0xf5   : > { %1263 = vrot.lane.b32.xlu0 %v3060_v62, %s2551_s16 }
  0xf6   : > { %2133 = vmatpush3.bf16.msra.mxu0 %v2946_v51  ;;  %v3089_v51 = vrot.slane %v3023_v41, 5  ;;  %v3118_v37 = vpop.permute.xlu0 %469 }
  0xf7   : > { %2134 = vmatprep.subr.bf16.mxu0 %v2976_v23  ;;  %v510_v23 = vsel %vm350_vm6, %v2872_v63, %v2856_v54  ;;  %v505_v54 = vsel %vm342_vm0, %v2870_v61, %v2868_v60  ;;  %v3114_v63 = vpop.permute.xlu1 %471  ;;  %v3131_v60 = vrot.slane %v3023_v41, 1  ;;  %v3137_v61 = vld [vmem:[%s3952_s1 + $0x2c] ss:$20 sps:$4 sm:$0xff]  }
  0xf8   : > { %1268 = vrot.lane.b32.xlu1 %v3068_v43, %s2549_s14  ;;  %v475_v2 = vsel %vm473_vm3, %v3118_v37, %v3114_v63  ;;  %v3287_v3 = vsel %vm296_vm5, %v3089_v51, %v1218_v8  ;;  %v1281_v63 = vrot.slane %v3047_v28, 5 }
  0xf9   : > { %1478 = vrot.lane.b32.xlu0 %v3075_v21, %s2551_s16  ;;  %v3153_v7 = vsel %vm331_vm1, %v3131_v60, %v3109_v4 }
  0xfa   : > { %2135 = vmatpush3.bf16.msra.mxu0 %v485_v1  ;;  %v3160_v10 = vpop.permute.xlu0 %455 }
  0xfb   : > { %2136 = vmatprep.subr.bf16.mxu0 %v510_v23 }
  0xfc   : > { %1482 = vrot.lane.b32.xlu1 %v3081_v31, %s2549_s14 }
  0xfd   : > { %1220 = vrot.lane.b32.xlu0 %v3089_v51, %s2550_s15 }
  0xfe   : > { %2137 = vmatpush3.bf16.msra.mxu0 %v480_v57  ;;  %v3193_v32 = vpop.permute.xlu0 %465  ;;  %v3262_v57 = vsel %vm3976_vm4, %v3247_v36, %v3237_v47  ;;  %vm443_vm4 = vcmask 941056  }
  0xff   : > { %2138 = vmatprep.subr.bf16.mxu0 %v505_v54 }
 0x100   : > { %1440 = vrot.lane.b32.xlu1 %v3101_v55, %s2550_s15 }
 0x101   : > { %1255 = vrot.lane.b32.xlu0 %v3109_v4, %s2552_s17 }
 0x102   : > { %2139 = vmatpush3.bf16.msra.mxu0 %v2666_v5  ;;  %v3148_v5 = vpop.permute.xlu1 %457 }
 0x103   : > { %2296 = vmatprep.subr.bf16.mxu0 %v3979_v34 }
 0x104   : > { %1261 = vrot.lane.b32.xlu1 %v3042_v24, %s2551_s16 }
 0x105   : > { %1471 = vrot.lane.b32.xlu0 %v3123_v12, %s2552_s17  ;;  %873 = vmatmul.mubr.bf16.vlgmr.msra.gmra.mxu0 %v3128_v56 }
 0x106   : > { %880 = vmatprep.mubr.bf16.mxu0 %v3137_v61  ;;  %v3189_v30 = vpop.permute.xlu1 %467 }
 0x108   : > { %1476 = vrot.lane.b32.xlu1 %v3063_v0, %s2551_s16  ;;  %s2568_s16 = smov [#allocation2]  }
 0x109   : > { %1253 = vrot.lane.b32.xlu0 %v3153_v7, %s2552_s17 }
 0x10a   : > { %v664_v13 = vpop.permute.xlu1 %663 }
 0x10b   : > { %v662_v16 = vpop.permute.xlu0 %661 }
 0x10c   : > { %1469 = vrot.lane.b32.xlu1 %v3170_v17, %s2552_s17  ;;  %v711_v22 = vsel %vm709_vm15, %v662_v16, %v664_v13  ;;  %v461_v16 = vsel %vm3977_vm14, %v3160_v10, %v3148_v5 }
 0x10d   : > { %1246 = vrot.lane.b32.xlu0 %v3181_v19, %s2553_s18  ;;  %881 = vmatmul.mubr.bf16.gmra.mxu0 %v3177_v18 }
 0x10e   : > { %888 = vmatprep.mubr.bf16.mxu0 %v3187_v27 }
 0x110   : > { %1251 = vrot.lane.b32.xlu1 %v3131_v60, %s2552_s17 }
 0x111   : > { %1463 = vrot.lane.b32.xlu0 %v3200_v33, %s2553_s18 }
 0x114   : > { %1467 = vrot.lane.b32.xlu1 %v3145_v6, %s2552_s17  ;;  %s4015_s17 = smov 113  }
 0x115   : > { %1239 = vrot.lane.b32.xlu0 %v3215_v40, %s2554_s19  ;;  %889 = vmatmul.mubr.bf16.gmra.mxu0 %v3211_v11 }
 0x116   : > { %v692_v45 = vpop.permute.xlu1 %691  ;;  %2302 = vmatprep.mubr.msk.bf16.mxu0 %vm2567_vm13, %v3979_v34 }
 0x117   : > { %v690_v14 = vpop.permute.xlu0 %689 }
 0x118   : > { %1244 = vrot.lane.b32.xlu1 %v3156_v29, %s2553_s18  ;;  %v718_v23 = vsel %vm709_vm15, %v690_v14, %v692_v45  ;;  %v474_v45 = vsel %vm473_vm3, %v3193_v32, %v3189_v30  ;;  %v1282_v30 = vsel %vm296_vm5, %v3101_v55, %v1281_v63 }
 0x119   : > { %1457 = vrot.lane.b32.xlu0 %v3228_v46, %s2554_s19 }
 0x11a   : > { %v688_v49 = vpop.permute.xlu1 %687 }
 0x11b   : > { %v686_v50 = vpop.permute.xlu0 %685 }
 0x11c   : > { %1461 = vrot.lane.b32.xlu1 %v3184_v20, %s2553_s18  ;;  %v717_v13 = vsel %vm709_vm15, %v686_v50, %v688_v49  ;;  %v538_v50 = vsel %vm350_vm6, %v461_v16, %v474_v45  ;;  %s4017_s18 = smov 114  }
 0x11d   : > { %1231 = vrot.lane.b32.xlu0 %v3237_v47, %s2555_s20 }
 0x11e   : > { %v696_v25 = vpop.permute.xlu1 %695 }
 0x11f   : > { %v694_v38 = vpop.permute.xlu0 %693 }
 0x120   : > { %v719_v59 = vsel %vm709_vm15, %v694_v38, %v696_v25  ;;  %1237 = vrot.lane.b32.xlu1 %v3203_v35, %s2554_s19 }
 0x121   : > { %2158 = vmatprep.subr.bf16.mxu1 %v719_v59  ;;  %1450 = vrot.lane.b32.xlu0 %v3244_v52, %s2555_s20 }
 0x122   : > { %v684_v1 = vpop.permute.xlu1 %683  ;;  %2159 = vmatpush3.bf16.msra.mxu1 %v711_v22 }
 0x123   : > { %2160 = vmatprep.subr.bf16.mxu1 %v718_v23  ;;  %v682_v54 = vpop.permute.xlu0 %681 }
 0x124   : > { %1455 = vrot.lane.b32.xlu1 %v3218_v15, %s2554_s19  ;;  %v716_v49 = vsel %vm709_vm15, %v682_v54, %v684_v1  ;;  %v1266_v1 = vrot.slane %v3025_v42, 3  ;;  %s4020_s19 = smov 115  }
 0x125   : > { %1229 = vrot.lane.b32.xlu0 %v3262_v57, %s2555_s20 }
 0x126   : > { %v442_v39 = vpop.permute.xlu1 %441  ;;  %2161 = vmatpush3.bf16.msra.mxu1 %v710_v9  ;;  %v1371_v9 = vrot.slane %v3047_v28, 3 }
 0x127   : > { %2162 = vmatprep.subr.bf16.mxu1 %v717_v13  ;;  %v440_v44 = vpop.permute.xlu0 %439 }
 0x128   : > { %1448 = vrot.lane.b32.xlu1 %v3272_v26, %s2555_s20  ;;  %v446_v25 = vsel %vm443_vm4, %v440_v44, %v442_v39  ;;  %v3320_v39 = vsel %vm350_vm6, %v3068_v43, %v1266_v1 }
 0x129   : > { %1275 = vrot.lane.b32.xlu0 %v3025_v42, %s2556_s26 }
 0x12a   : > { %v454_v14 = vpop.permute.xlu1 %453  ;;  %2163 = vmatpush3.bf16.msra.mxu1 %v475_v2  ;;  %v3327_v2 = vsel %vm350_vm6, %v3081_v31, %v1371_v9 }
 0x12b   : > { %2164 = vmatprep.subr.bf16.mxu1 %v716_v49  ;;  %v452_v37 = vpop.permute.xlu0 %451 }
 0x12c   : > { %1490 = vrot.lane.b32.xlu1 %v3047_v28, %s2556_s26  ;;  %v460_v5 = vsel %vm3977_vm14, %v452_v37, %v454_v14  ;;  %vm3978_vm14 = vcmask 949248  }
 0x12d   : > { %1222 = vrot.lane.b32.xlu0 %v3287_v3, %s2550_s15  ;;  %v534_v59 = vsel %vm342_vm0, %v446_v25, %v460_v5 }
 0x12e   : > { %v680_v10 = vpop.permute.xlu1 %679  ;;  %2165 = vmatpush3.bf16.msra.mxu1 %v538_v50 }
 0x12f   : > { %v678_v32 = vpop.permute.xlu0 %677 }
 0x130   : > { %v715_v38 = vsel %vm709_vm15, %v678_v32, %v680_v10  ;;  %1227 = vrot.lane.b32.xlu1 %v3247_v36, %s2555_s20 }
 0x131   : > { %2166 = vmatprep.subr.bf16.mxu1 %v715_v38  ;;  %1442 = vrot.lane.b32.xlu0 %v1282_v30, %s2550_s15  ;;  %s4000_s15 = smov 117  }
 0x132   : > { %v676_v22 = vpop.permute.xlu1 %675  ;;  %2167 = vmatpush3.bf16.msra.mxu1 %v534_v59 }
 0x133   : > { %v674_v23 = vpop.permute.xlu0 %673 }
 0x134   : > { %v714_v54 = vsel %vm709_vm15, %v674_v23, %v676_v22  ;;  %1446 = vrot.lane.b32.xlu1 %v3256_v53, %s2555_s20  ;;  %s4027_s20 = smov 116  }
 0x135   : > { %2168 = vmatprep.subr.bf16.mxu1 %v714_v54  ;;  %1273 = vrot.lane.b32.xlu0 %v3023_v41, %s2556_s26 }
 0x136   : > { %v438_v8 = vpop.permute.xlu1 %437 }
 0x137   : > { %v436_v13 = vpop.permute.xlu0 %435 }
 0x138   : > { %v445_v44 = vsel %vm443_vm4, %v436_v13, %v438_v8  ;;  %1488 = vrot.lane.b32.xlu1 %v3045_v58, %s2556_s26  ;;  %v270_v13 = vld [vmem:[%s3952_s1 + $0x58] sm:$0xff] }
 0x139   : > { %2169 = vmatpush3.bf16.msra.mxu1 %v445_v44  ;;  %1270 = vrot.lane.b32.xlu0 %v3320_v39, %s2549_s14 }
 0x13a   : > { %v424_v16 = vpop.permute.xlu1 %423 }
 0x13b   : > { %v422_v45 = vpop.permute.xlu0 %421 }
 0x13c   : > { %1484 = vrot.lane.b32.xlu1 %v3327_v2, %s2549_s14  ;;  %v427_v5 = vsel %vm3978_vm14, %v422_v45, %v424_v16  ;;  %s4001_s14 = smov 119   ;;  %v3389_v16 = vld [vmem:[%s3952_s1 + $0x10] ss:$20 sps:$4 sm:$0xff]  }
 0x13d   : > { %1304 = vrot.lane.b32.xlu0 %v3237_v47, %s2557_s28  ;;  %4004 = vst [vmem:[#allocation9_spill] sm:$0xff] %v3389_v16  ;;  %v3394_v45 = vld [vmem:[%s3952_s1 + $0x30] ss:$20 sps:$4 sm:$0xff]  }
 0x13e   : > { %v434_v14 = vpop.permute.xlu1 %433  ;;  %4005 = vst [vmem:[#allocation10_spill] sm:$0xff] %v3394_v45 }
 0x13f   : > { %v432_v49 = vpop.permute.xlu0 %431 }
 0x140   : > { %1306 = vrot.lane.b32.xlu1 %v3244_v52, %s2557_s28  ;;  %v444_v63 = vsel %vm443_vm4, %v432_v49, %v434_v14  ;;  %v3396_v14 = vcombine.high %v270_v13, %v270_v13  ;;  %v3407_v49 = vld [vmem:[%s3952_s1 + $0x38] ss:$20 sps:$4 sm:$0xff]  }
 0x141   : > { %1315 = vrot.lane.b32.xlu0 %v3203_v35, %s4000_s15  ;;  %v530_v47 = vsel %vm331_vm1, %v427_v5, %v444_v63  ;;  %4007 = vst [vmem:[#allocation12_spill] sm:$0xff] %v3407_v49  ;;  %v3409_v63 = vcombine.low %v270_v13, %v270_v13 }
 0x142   : > { %v672_v37 = vpop.permute.xlu1 %671  ;;  %4006 = vst [vmem:[#allocation11_spill] sm:$0xff] %v3396_v14 }
 0x143   : > { %v670_v50 = vpop.permute.xlu0 %669  ;;  %4008 = vst [vmem:[#allocation13_spill] sm:$0xff] %v3409_v63 }
 0x144   : > { %v713_v10 = vsel %vm709_vm15, %v670_v50, %v672_v37  ;;  %1317 = vrot.lane.b32.xlu1 %v3218_v15, %s4000_s15 }
 0x145   : > { %2170 = vmatprep.subr.bf16.mxu1 %v713_v10  ;;  %1300 = vrot.lane.b32.xlu0 %v3262_v57, %s2557_s28 }
 0x146   : > { %v708_v52 = vpop.permute.xlu1 %707  ;;  %2171 = vmatpush3.bf16.msra.mxu1 %v530_v47  ;;  %v3429_v47 = vld [vmem:[%s3952_s1 + $0x60] ss:$0 sps:$4 sm:$0xff]  }
 0x147   : > { %v706_v35 = vpop.permute.xlu0 %705  ;;  %4013 = vst [vmem:[#allocation18_spill] sm:$0xff] %v3429_v47 }
 0x148   : > { %v722_v32 = vsel %vm709_vm15, %v706_v35, %v708_v52  ;;  %1302 = vrot.lane.b32.xlu1 %v3272_v26, %s2557_s28 }
 0x149   : > { %v838_v25 = vsel %vm296_vm5, %v722_v32, 0  ;;  %1287 = vrot.lane.b32.xlu0 %v3287_v3, %s4001_s14 }
 0x14a   : > { %v410_v15 = vpop.permute.xlu1 %409  ;;  %2297 = vmatpush3.bf16.msra.mxu0 %v838_v25 }
 0x14b   : > { %v408_v38 = vpop.permute.xlu0 %407  ;;  %2298 = vmatprep.subr.bf16.mxu0 %v3979_v34 }
 0x14c   : > { %1289 = vrot.lane.b32.xlu1 %v1282_v30, %s4001_s14  ;;  %v413_v1 = vsel %vm411_vm12, %v408_v38, %v410_v15  ;;  %v3375_v30 = vld [vmem:[%s3952_s1 + $0x34] ss:$20 sps:$4 sm:$0xff]  }
 0x14d   : > { %1296 = vrot.lane.b32.xlu0 %v3247_v36, %s2557_s28  ;;  %4003 = vst [vmem:[#allocation8_spill] sm:$0xff] %v3375_v30 }
 0x14e   : > { %v420_v57 = vpop.permute.xlu1 %419 }
 0x14f   : > { %v418_v59 = vpop.permute.xlu0 %417 }
 0x150   : > { %1298 = vrot.lane.b32.xlu1 %v3256_v53, %s2557_s28  ;;  %v426_v26 = vsel %vm3978_vm14, %v418_v59, %v420_v57  ;;  %v3370_v53 = vld [vmem:[%s3952_s1 + $0x8] ss:$20 sps:$4 sm:$0xff]   ;;  %vm827_vm14 = vcmask 310272  }
 0x151   : > { %1283 = vrot.lane.b32.xlu0 %v3089_v51, %s4001_s14  ;;  %v526_v36 = vsel %vm323_vm2, %v413_v1, %v426_v26  ;;  %4002 = vst [vmem:[#allocation7_spill] sm:$0xff] %v3370_v53 }
 0x152   : > { %v668_v3 = vpop.permute.xlu1 %667 }
 0x153   : > { %v666_v22 = vpop.permute.xlu0 %665 }
 0x154   : > { %v712_v23 = vsel %vm709_vm15, %v666_v22, %v668_v3  ;;  %1285 = vrot.lane.b32.xlu1 %v3101_v55, %s4001_s14 }
 0x155   : > { %2172 = vmatprep.subr.bf16.mxu1 %v712_v23 }
 0x156   : > { %v704_v51 = vpop.permute.xlu1 %703  ;;  %2173 = vmatpush3.bf16.msra.mxu1 %v526_v36 }
 0x157   : > { %v702_v54 = vpop.permute.xlu0 %701  ;;  %2314 = vmatprep.subr.mxu1 %v3979_v34 }
 0x158   : > { %v721_v55 = vsel %vm709_vm15, %v702_v54, %v704_v51 }
 0x159   : > { %929 = vmatmul.mubr.bf16.vlgmr.msra.gmra.mxu1 %v3370_v53  ;;  %2299 = vmatpush3.bf16.msra.mxu0 %v721_v55 }
 0x15a   : > { %v700_v9 = vpop.permute.xlu1 %699  ;;  %2300 = vmatprep.subr.bf16.mxu0 %v3979_v34  ;;  %936 = vmatprep.mubr.bf16.mxu1 %v3375_v30 }
 0x15b   : > { %v698_v8 = vpop.permute.xlu0 %697 }
 0x15c   : > { %v720_v44 = vsel %vm709_vm15, %v698_v8, %v700_v9 }
 0x15d   : > { %2301 = vmatpush3.bf16.msra.mxu0 %v720_v44 }
 0x160   : > { %2303 = vmatmul.mubr.msk.bf16.vlgmr.msra.gmra.mxu0 %vm827_vm14, %v3389_v16 }
 0x161   : > { %937 = vmatmul.mubr.bf16.gmra.mxu1 %v3394_v45  ;;  %2306 = vmatprep.mubr.msk.bf16.mxu0 %vm2567_vm13, %v3979_v34 }
 0x162   : > { %944 = vmatprep.mubr.bf16.mxu1 %v3396_v14 }
 0x167   : > { %v3411_v37 = vpop.permute.xlu1 %752 }
 0x168   : > { %4009 = vst [vmem:[#allocation14_spill] sm:$0xff] %v3411_v37  ;;  %2307 = vmatmul.mubr.msk.bf16.gmra.mxu0 %vm827_vm14, %v3407_v49  ;;  %v3415_v50 = vpop.permute.xlu0 %757 }
 0x169   : > { %4010 = vst [vmem:[#allocation15_spill] sm:$0xff] %v3415_v50  ;;  %945 = vmatmul.mubr.bf16.gmra.mxu1 %v3409_v63  ;;  %2310 = vmatprep.mubr.msk.bf16.mxu0 %vm2567_vm13, %v3979_v34 }
 0x16a   : > { %2324 = vmatprep.mubr.msk.f32.mxu1 %vm2567_vm13, %v3979_v34 }
 0x16b   : > { %v3422_v5 = vpop.permute.xlu1 %747 }
 0x16c   : > { %4011 = vst [vmem:[#allocation16_spill] sm:$0xff] %v3422_v5  ;;  %v3424_v10 = vpop.permute.xlu0 %742 }
 0x16d   : > { %4012 = vst [vmem:[#allocation17_spill] sm:$0xff] %v3424_v10 }
 0x16f   : > { %v3431_v52 = vpop.permute.xlu1 %737 }
 0x170   : > { %4014 = vst [vmem:[#allocation19_spill] sm:$0xff] %v3431_v52  ;;  %2311 = vmatmul.mubr.msk.bf16.gmra.mxu0 %vm827_vm14, %v3429_v47  ;;  %v1264_v35 = vpop.permute.xlu0 %1263 }
 0x171   : > { %1661 = vmatprep.mubr.bf16.mxu0 %v2940_v48 }
 0x173   : > { %v1269_v32 = vpop.permute.xlu1 %1268 }
 0x174   : > { %v1479_v25 = vpop.permute.xlu0 %1478  ;;  %v3437_v15 = vsel %vm350_vm6, %v1264_v35, %v1269_v32 }
 0x175   : > { %v3440_v38 = vsel %vm585_vm9, %v1264_v35, %v1479_v25 }
 0x177   : > { %v1483_v57 = vpop.permute.xlu1 %1482 }
 0x178   : > { %v3443_v59 = vsel %vm592_vm10, %v1269_v32, %v1483_v57  ;;  %v1534_v26 = vsel %vm350_vm6, %v1479_v25, %v1483_v57  ;;  %v3446_v3 = vpop.permute.xlu0 %1220 }
 0x179   : > { %1587 = vrot.lane.b32.xlu1 %v1534_v26, %s2561_s10 }
 0x17b   : > { %v1441_v22 = vpop.permute.xlu1 %1440 }
 0x17c   : > { %v1498_v48 = vsel %vm296_vm5, %v3047_v28, %v1441_v22  ;;  %v3453_v1 = vsel %vm544_vm7, %v3446_v3, %v1441_v22  ;;  %v1256_v23 = vpop.permute.xlu0 %1255 }
 0x17d   : > { %1555 = vrot.lane.b32.xlu1 %v1498_v48, %s2561_s10 }
 0x17f   : > { %v1262_v36 = vpop.permute.xlu1 %1261 }
 0x180   : > { %v1472_v51 = vpop.permute.xlu0 %1471  ;;  %v3457_v54 = vsel %vm342_vm0, %v1256_v23, %v1262_v36 }
 0x181   : > { %v3460_v55 = vsel %vm577_vm8, %v1256_v23, %v1472_v51 }
 0x183   : > { %v1477_v9 = vpop.permute.xlu1 %1476 }
 0x184   : > { %v3463_v8 = vsel %vm585_vm9, %v1262_v36, %v1477_v9  ;;  %v1528_v28 = vsel %vm342_vm0, %v1472_v51, %v1477_v9  ;;  %v3466_v13 = vpop.permute.xlu0 %1253  ;;  %vm4016_vm9 = vcmask 1022976  }
 0x185   : > { %1583 = vrot.lane.b32.xlu1 %v1528_v28, %s2561_s10 }
 0x187   : > { %v1470_v44 = vpop.permute.xlu1 %1469 }
 0x188   : > { %v3471_v35 = vsel %vm577_vm8, %v3466_v13, %v1470_v44  ;;  %v3473_v32 = vpop.permute.xlu0 %1246 }
 0x189   : > { %1551 = vrot.lane.b32.xlu1 %v3045_v58, %s2561_s10 }
 0x18b   : > { %v3477_v25 = vpop.permute.xlu1 %1251 }
 0x18c   : > { %v1464_v57 = vpop.permute.xlu0 %1463 }
 0x18d   : > { %v3481_v26 = vsel %vm568_vm11, %v3473_v32, %v1464_v57  ;;  %1579 = vrot.lane.b32.xlu1 %v1470_v44, %s2561_s10 }
 0x18f   : > { %v1468_v22 = vpop.permute.xlu1 %1467 }
 0x190   : > { %v3486_v48 = vsel %vm577_vm8, %v3477_v25, %v1468_v22  ;;  %v3488_v23 = vpop.permute.xlu0 %1239  ;;  %vm4018_vm8 = vcmask 1031168  }
 0x191   : > { %1379 = vrot.lane.b32.xlu1 %v3327_v2, %s4015_s17  ;;  %v1522_v2 = vsel %vm331_vm1, %v1464_v57, %v1468_v22 }
 0x193   : > { %v3492_v58 = vpop.permute.xlu1 %1244 }
 0x194   : > { %v1458_v36 = vpop.permute.xlu0 %1457 }
 0x195   : > { %v3496_v51 = vsel %vm4016_vm9, %v3488_v23, %v1458_v36  ;;  %1366 = vrot.lane.b32.xlu1 %v3075_v21, %s4017_s18 }
 0x197   : > { %v1462_v9 = vpop.permute.xlu1 %1461 }
 0x198   : > { %v3502_v28 = vsel %vm568_vm11, %v3492_v58, %v1462_v9  ;;  %v3504_v44 = vpop.permute.xlu0 %1231  ;;  %vm4019_vm11 = vmmov %vm4016_vm9 }
 0x199   : > { %1375 = vrot.lane.b32.xlu1 %v3081_v31, %s4015_s17  ;;  %vm4021_vm9 = vmmov %vm4018_vm8 }
 0x19b   : > { %v3509_v34 = vpop.permute.xlu1 %1237 }
 0x19c   : > { %v1451_v63 = vpop.permute.xlu0 %1450 }
 0x19d   : > { %v3513_v14 = vsel %vm4018_vm8, %v3504_v44, %v1451_v63  ;;  %1575 = vrot.lane.b32.xlu1 %v1522_v2, %s2561_s10  ;;  %v1516_v2 = vsel %vm323_vm2, %v1458_v36, %v1462_v9  ;;  %vm4022_vm8 = vcmask 982016  }
 0x19f   : > { %v1456_v21 = vpop.permute.xlu1 %1455 }
 0x1a0   : > { %v3518_v45 = vsel %vm4019_vm11, %v3509_v34, %v1456_v21  ;;  %v3520_v30 = vpop.permute.xlu0 %1229  ;;  %vm4023_vm11 = vcmask 1040384  }
 0x1a1   : > { %1351 = vrot.lane.b32.xlu1 %v3123_v12, %s4020_s19  ;;  %v1510_v12 = vsel %vm4023_vm11, %v1451_v63, %v1456_v21 }
 0x1a3   : > { %v1449_v31 = vpop.permute.xlu1 %1448 }
 0x1a4   : > { %v3526_v57 = vsel %vm4021_vm9, %v3520_v30, %v1449_v31  ;;  %v3528_v22 = vpop.permute.xlu0 %1275 }
 0x1a5   : > { %1362 = vrot.lane.b32.xlu1 %v3063_v0, %s4017_s18 }
 0x1a7   : > { %v1491_v53 = vpop.permute.xlu1 %1490 }
 0x1a8   : > { %v3535_v47 = vsel %vm4022_vm8, %v3528_v22, %v1491_v53  ;;  %v3537_v49 = vpop.permute.xlu0 %1222 }
 0x1a9   : > { %1571 = vrot.lane.b32.xlu1 %v1516_v2, %s2561_s10 }
 0x1ab   : > { %v3541_v16 = vpop.permute.xlu1 %1227 }
 0x1ac   : > { %v1443_v52 = vpop.permute.xlu0 %1442 }
 0x1ad   : > { %v3545_v10 = vsel %vm544_vm7, %v3537_v49, %v1443_v52  ;;  %1567 = vrot.lane.b32.xlu1 %v1510_v12, %s2561_s10  ;;  %vm4029_vm7 = vcmask 965632  }
 0x1ae   : > { %4024 = vst [vmem:[#allocation20_spill] sm:$0xff] %v3545_v10 }
 0x1af   : > { %v1447_v0 = vpop.permute.xlu1 %1446 }
 0x1b0   : > { %v3550_v36 = vsel %vm4021_vm9, %v3541_v16, %v1447_v0  ;;  %v1274_v9 = vpop.permute.xlu0 %1273  ;;  %vm4031_vm9 = vcmask 1045504  }
 0x1b1   : > { %4025 = vst [vmem:[#allocation21_spill] sm:$0xff] %v3550_v36  ;;  %1347 = vrot.lane.b32.xlu1 %v3170_v17, %s4020_s19 }
 0x1b3   : > { %v1489_v2 = vpop.permute.xlu1 %1488 }
 0x1b4   : > { %v3555_v63 = vsel %vm4022_vm8, %v1274_v9, %v1489_v2  ;;  %v3557_v21 = vpop.permute.xlu0 %1270  ;;  %vm4032_vm8 = vcmask 973824  }
 0x1b5   : > { %4026 = vst [vmem:[#allocation22_spill] sm:$0xff] %v3555_v63  ;;  %1334 = vrot.lane.b32.xlu1 %v3200_v33, %s4027_s20 }
 0x1b7   : > { %v1485_v10 = vpop.permute.xlu1 %1484 }
 0x1b8   : > { %v3563_v12 = vsel %vm592_vm10, %v3557_v21, %v1485_v10  ;;  %v1305_v50 = vpop.permute.xlu0 %1304  ;;  %vm4030_vm10 = vmmov %vm4029_vm7 }
 0x1b9   : > { %4028 = vst [vmem:[#allocation23_spill] sm:$0xff] %v3563_v12  ;;  %1343 = vrot.lane.b32.xlu1 %v3145_v6, %s4020_s19  ;;  %v1402_v6 = vsel %vm331_vm1, %v3473_v32, %v3477_v25 }
 0x1bb   : > { %v1307_v36 = vpop.permute.xlu1 %1306 }
 0x1bc   : > { %v1316_v17 = vpop.permute.xlu0 %1315  ;;  %v1310_v63 = vsel %vm4029_vm7, %v1305_v50, %v1307_v36 }
 0x1bd   : > { %1563 = vrot.lane.b32.xlu1 %v1449_v31, %s2561_s10 }
 0x1bf   : > { %v1318_v5 = vpop.permute.xlu1 %1317 }
 0x1c0   : > { %v1323_v37 = vsel %vm411_vm12, %v1316_v17, %v1318_v5  ;;  %v1301_v29 = vpop.permute.xlu0 %1300 }
 0x1c1   : > { %v1422_v33 = vsel %vm4023_vm11, %v1310_v63, %v1323_v37  ;;  %1599 = vrot.lane.b32.xlu1 %v1491_v53, %s2561_s10  ;;  %vm4033_vm11 = vmmov %vm4031_vm9 }
 0x1c2   : > { %2210 = vmatprep.subr.bf16.mxu0 %v1422_v33 }
 0x1c3   : > { %v1303_v12 = vpop.permute.xlu1 %1302  ;;  %2211 = vmatpush3.bf16.msra.mxu0 %v3466_v13  ;;  %v1504_v13 = vsel %vm4031_vm9, %v1443_v52, %v1447_v0  ;;  %vm4035_vm9 = vmmov %vm4032_vm8 }
 0x1c4   : > { %v1288_v40 = vpop.permute.xlu0 %1287  ;;  %v1309_v31 = vsel %vm4030_vm10, %v1301_v29, %v1303_v12  ;;  %vm4034_vm10 = vcmask 1040384  }
 0x1c5   : > { %2212 = vmatprep.subr.bf16.mxu0 %v1309_v31  ;;  %v2140_v50 = vpop.f32.mrf.mxu0  ;;  %1321 = vrot.lane.b32.xlu1 %v3228_v46, %s4000_s15  ;;  %v1398_v46 = vsel %vm323_vm2, %v3488_v23, %v3492_v58  ;;  %v1394_v52 = vsel %vm4034_vm10, %v3504_v44, %v3509_v34 }
 0x1c7   : > { %v1290_v5 = vpop.permute.xlu1 %1289  ;;  %2213 = vmatpush3.bf16.msra.mxu0 %v1402_v6  ;;  %v2141_v37 = vpop.f32.mrf.mxu0 }
 0x1c8   : > { %v1297_v53 = vpop.permute.xlu0 %1296  ;;  %v3579_v36 = vadd.f32 %v2141_v37, %v2140_v50  ;;  %v1292_v32 = vsel %vm4032_vm8, %v1288_v40, %v1290_v5  ;;  %vm4036_vm8 = vmmov %vm4033_vm11 }
 0x1c9   : > { %v2143_v63 = vpop.f32.mrf.mxu0  ;;  %1330 = vrot.lane.b32.xlu1 %v3184_v20, %s4027_s20  ;;  %v1390_v44 = vsel %vm4036_vm8, %v3537_v49, %v3541_v16  ;;  %v1513_v16 = vsel %vm323_vm2, %v3496_v51, %v3502_v28  ;;  %v4043_v51 = vld [vmem:[#allocation15_spill] sm:$0xff] }
 0x1cb   : > { %v1299_v29 = vpop.permute.xlu1 %1298  ;;  %v2144_v25 = vpop.f32.mrf.mxu0 }
 0x1cc   : > { %v1308_v12 = vsel %vm4029_vm7, %v1297_v53, %v1299_v29  ;;  %v3589_v17 = vadd.f32 %v2144_v25, %v2143_v63  ;;  %v1284_v6 = vpop.permute.xlu0 %1283  ;;  %vm4037_vm7 = vmmov %vm4034_vm10 }
 0x1cd   : > { %v1418_v33 = vsel %vm4033_vm11, %v1292_v32, %v1308_v12  ;;  %v2146_v31 = vpop.f32.mrf.mxu0  ;;  %1559 = vrot.lane.b32.xlu1 %v1504_v13, %s2561_s10  ;;  %v1507_v49 = vsel %vm4037_vm7, %v3513_v14, %v3518_v45  ;;  %v4038_v45 = vmov 0.0   ;;  %v4044_v12 = vld [vmem:[#allocation17_spill] sm:$0xff]  ;;  %vm4048_vm11 = vmmov %vm4036_vm8 }
 0x1ce   : > { %2214 = vmatprep.subr.bf16.mxu0 %v1418_v33  ;;  %v878_v33 = vadd.f32 %v3589_v17, %v4044_v12 }
 0x1cf   : > { %v1286_v20 = vpop.permute.xlu1 %1285  ;;  %2215 = vmatpush3.bf16.msra.mxu0 %v1398_v46  ;;  %v2147_v40 = vpop.f32.mrf.mxu0 }
 0x1d0   : > { %v1291_v23 = vsel %vm4035_vm9, %v1284_v6, %v1286_v20  ;;  %v3597_v58 = vadd.f32 %v2147_v40, %v2146_v31  ;;  %vm4051_vm9 = vcmask 982016  }
 0x1d1   : > { %v1414_v0 = vsel %vm296_vm5, %v3528_v22, %v1291_v23  ;;  %v2149_v50 = vpop.f32.mrf.mxu0  ;;  %1595 = vrot.lane.b32.xlu1 %v1489_v2, %s2561_s10  ;;  %vm4052_vm7 = vmmov %vm4051_vm9 }
 0x1d2   : > { %2216 = vmatprep.subr.bf16.mxu0 %v1414_v0 }
 0x1d3   : > { %2217 = vmatpush3.bf16.msra.mxu0 %v1394_v52  ;;  %v2150_v5 = vpop.f32.mrf.mxu0 }
 0x1d4   : > { %2218 = vmatprep.subr.bf16.mxu0 %v1274_v9  ;;  %v2151_v37 = vadd.f32 %v2150_v5, %v2149_v50  ;;  %v1531_v9 = vsel %vm350_vm6, %v3440_v38, %v3443_v59  ;;  %v1495_v59 = vsel %vm296_vm5, %v3025_v42, %v3453_v1  ;;  %v4045_v50 = vld [vmem:[#allocation19_spill] sm:$0xff] }
 0x1d5   : > { %v2152_v53 = vpop.f32.mrf.mxu0  ;;  %1591 = vrot.lane.b32.xlu1 %v1485_v10, %s2561_s10  ;;  %v1525_v10 = vsel %vm342_vm0, %v3460_v55, %v3463_v8  ;;  %1585 = vrot.lane.b32.xlu0 %v1531_v9, %s2561_s10  ;;  %v1386_v55 = vsel %vm296_vm5, %v3025_v42, %v3446_v3  ;;  %v875_v5 = vadd.f32 %v3579_v36, %v4045_v50 }
 0x1d7   : > { %2219 = vmatpush3.bf16.msra.mxu0 %v3520_v30  ;;  %v2153_v34 = vpop.f32.mrf.mxu0  ;;  %v1519_v30 = vsel %vm331_vm1, %v3481_v26, %v3486_v48 }
 0x1d8   : > { %2220 = vmatprep.subr.bf16.mxu0 %v3557_v21  ;;  %v3608_v22 = vadd.f32 %v2153_v34, %v2152_v53 }
 0x1d9   : > { %v2155_v2 = vpop.f32.mrf.mxu0  ;;  %1553 = vrot.lane.b32.xlu0 %v1495_v59, %s2561_s10 }
 0x1da   : > { %v891_v28 = vadd.f32 %v3608_v22, %v4043_v51 }
 0x1db   : > { %2221 = vmatpush3.bf16.msra.mxu0 %v1390_v44  ;;  %v2156_v38 = vpop.f32.mrf.mxu0 }
 0x1dc   : > { %2222 = vmatprep.subr.bf16.mxu0 %v3437_v15  ;;  %v4049_v38 = vld [vmem:[#allocation22_spill] sm:$0xff] }
 0x1dd   : > { %1581 = vrot.lane.b32.xlu0 %v1525_v10, %s2561_s10  ;;  %v4046_v10 = vld [vmem:[#allocation21_spill] sm:$0xff] }
 0x1df   : > { %2223 = vmatpush3.bf16.msra.mxu0 %v1386_v55 }
 0x1e0   : > { %2224 = vmatprep.subr.bf16.mxu0 %v3457_v54 }
 0x1e1   : > { %1549 = vrot.lane.b32.xlu0 %v3023_v41, %s2561_s10 }
 0x1e3   : > { %2225 = vmatpush3.bf16.msra.mxu0 %v3023_v41 }
 0x1e4   : > { %2340 = vmatprep.subr.bf16.mxu0 %v4038_v45 }
 0x1e5   : > { %1577 = vrot.lane.b32.xlu0 %v3471_v35, %s2561_s10  ;;  %v4042_v35 = vld [vmem:[#allocation16_spill] sm:$0xff] }
 0x1e6   : > { %1662 = vmatmul.mubr.bf16.vlgmr.msra.gmra.mxu0 %v3128_v56  ;;  %v883_v26 = vadd.f32 %v3597_v58, %v4042_v35 }
 0x1e7   : > { %1669 = vmatprep.mubr.bf16.mxu0 %v3137_v61  ;;  %v4039_v61 = vld [vmem:[#allocation6_spill] sm:$0xff] }
 0x1e9   : > { %1377 = vrot.lane.b32.xlu0 %v3320_v39, %s4015_s17  ;;  %v4041_v39 = vld [vmem:[#allocation14_spill] sm:$0xff] }
 0x1ea   : > { %v886_v14 = vadd.f32 %v2151_v37, %v4041_v39 }
 0x1ed   : > { %1364 = vrot.lane.b32.xlu0 %v3060_v62, %s4017_s18 }
 0x1ee   : > { %1670 = vmatmul.mubr.bf16.gmra.mxu0 %v3177_v18 }
 0x1ef   : > { %1677 = vmatprep.mubr.bf16.mxu0 %v3187_v27  ;;  %v4040_v27 = vld [vmem:[#allocation5_spill] sm:$0xff] }
 0x1f1   : > { %1373 = vrot.lane.b32.xlu0 %v3068_v43, %s4015_s17  ;;  %s2491_s17 = sshll.u32 %s2568_s16, 4  ;;  %s2492_s17 = int_to_ptr.vmem [resolvable:$false] %s2491_s17 }
 0x1f5   : > { %1573 = vrot.lane.b32.xlu0 %v1519_v30, %s2561_s10  ;;  %v4047_v30 = vld [vmem:[#allocation20_spill] sm:$0xff] }
 0x1f6   : > { %1678 = vmatmul.mubr.bf16.gmra.mxu0 %v3211_v11 }
 0x1f7   : > { %2346 = vmatprep.mubr.msk.bf16.mxu0 %vm2567_vm13, %v4038_v45 }
 0x1f9   : > { %1349 = vrot.lane.b32.xlu0 %v3109_v4, %s4020_s19 }
 0x1fd   : > { %1360 = vrot.lane.b32.xlu0 %v3042_v24, %s4017_s18  ;;  %s2493_s18 = scalar_lea.vmem %s2492_s17, 256 }
 0x201   : > { %1569 = vrot.lane.b32.xlu0 %v1513_v16, %s2561_s10  ;;  %v1501_v16 = vsel %vm4048_vm11, %v4047_v30, %v4046_v10 }
 0x205   : > { %1565 = vrot.lane.b32.xlu0 %v1507_v49, %s2561_s10  ;;  %v3689_v49 = vpop.permute.xlu1 %1587 }
 0x209   : > { %1345 = vrot.lane.b32.xlu0 %v3153_v7, %s4020_s19  ;;  %v1556_v59 = vpop.permute.xlu1 %1555 }
 0x20d   : > { %1332 = vrot.lane.b32.xlu0 %v3181_v19, %s4027_s20 }
 0x211   : > { %1341 = vrot.lane.b32.xlu0 %v3131_v60, %s4020_s19 }
 0x215   : > { %1561 = vrot.lane.b32.xlu0 %v3526_v57, %s2561_s10 }
 0x219   : > { %v2174_v41 = vpop.f32.mrf.mxu1  ;;  %1597 = vrot.lane.b32.xlu0 %v3535_v47, %s2561_s10 }
 0x21b   : > { %v2175_v42 = vpop.f32.mrf.mxu1 }
 0x21c   : > { %v2176_v40 = vadd.f32 %v2175_v42, %v2174_v41  ;;  %v4050_v42 = vld [vmem:[#allocation23_spill] sm:$0xff] }
 0x21d   : > { %v2177_v62 = vpop.f32.mrf.mxu1  ;;  %1319 = vrot.lane.b32.xlu0 %v4039_v61, %s4000_s15 }
 0x21e   : > { %v931_v34 = vadd.f32 %v2176_v40, %v875_v5 }
 0x21f   : > { %v2178_v24 = vpop.f32.mrf.mxu1 }
 0x220   : > { %v986_v43 = vpop.f32.mrf.mxu0  ;;  %v2179_v63 = vadd.f32 %v2178_v24, %v2177_v62  ;;  %v3695_v24 = vpop.permute.xlu1 %1583 }
 0x221   : > { %v2180_v4 = vpop.f32.mrf.mxu1  ;;  %1328 = vrot.lane.b32.xlu0 %v4040_v27, %s4027_s20  ;;  %v987_v17 = vadd.f32 %v986_v43, %v931_v34  ;;  %s245_s20 = sand.u32 1, %s2539_s22  }
 0x222   : > { %v2304_v56 = vpop.f32.mrf.mxu0  ;;  %v934_v52 = vadd.f32 %v2179_v63, %v878_v33  ;;  %v3744_v33 = vld [vmem:[%s3955_s4 + $0x8] sm:$0xff]  ;;  %s3911_s14 = scalar_lea.sflag [#allocation3], %s245_s20 }
 0x223   : > { %v2181_v7 = vpop.f32.mrf.mxu1  ;;  %v1013_v36 = vmul.f32 1.442695, %v987_v17 }
 0x224   : > { %v989_v18 = vpop.f32.mrf.mxu0  ;;  %v2182_v47 = vadd.f32 %v2181_v7, %v2180_v4  ;;  %v1552_v61 = vpop.permute.xlu1 %1551 }
 0x225   : > { %v2183_v19 = vpop.f32.mrf.mxu1  ;;  %v990_v44 = vadd.f32 %v989_v18, %v934_v52  ;;  %1557 = vrot.lane.b32.xlu0 %v1501_v16, %s2561_s10 }
 0x226   : > { %v2305_v60 = vpop.f32.mrf.mxu0  ;;  %v939_v13 = vadd.f32 %v2182_v47, %v883_v26 }
 0x227   : > { %v2184_v11 = vpop.f32.mrf.mxu1  ;;  %v1015_v9 = vmul.f32 1.442695, %v990_v44 }
 0x228   : > { %v2185_v15 = vadd.f32 %v2184_v11, %v2183_v19  ;;  %v994_v3 = vpop.f32.mrf.mxu0  ;;  %v1580_v60 = vpop.permute.xlu1 %1579 }
 0x229   : > { %v2186_v1 = vpop.f32.mrf.mxu1  ;;  %v995_v23 = vadd.f32 %v994_v3, %v939_v13  ;;  %1593 = vrot.lane.b32.xlu0 %v4049_v38, %s2561_s10  ;;  %v3725_v13 = vld [vmem:[%s3955_s4 + $0x18] sm:$0xff] }
 0x22a   : > { %v2308_v54 = vpop.f32.mrf.mxu0  ;;  %v942_v8 = vadd.f32 %v2185_v15, %v886_v14 }
 0x22b   : > { %v2187_v48 = vpop.f32.mrf.mxu1  ;;  %v1017_v22 = vmul.f32 1.442695, %v995_v23  ;;  %vm1010_vm11 = vcmp.gt.f32.partialorder %v995_v23, 0.0 }
 0x22c   : > { %v2188_v57 = vadd.f32 %v2187_v48, %v2186_v1  ;;  %v997_v21 = vpop.f32.mrf.mxu0  ;;  %v1380_v47 = vpop.permute.xlu1 %1379 }
 0x22d   : > { %v998_v32 = vadd.f32 %v997_v21, %v942_v8  ;;  %v2189_v29 = vpop.f32.mrf.mxu1  ;;  %1589 = vrot.lane.b32.xlu0 %v4050_v42, %s2561_s10  ;;  %v3718_v21 = vld [vmem:[%s3955_s4 + $0x20] sm:$0xff]  ;;  %s2062_s10 = sshll.u32 %s245_s20, 3 }
 0x22e   : > { %v2309_v25 = vpop.f32.mrf.mxu0  ;;  %v947_v46 = vadd.f32 %v2188_v57, %v891_v28  ;;  %v3712_v28 = vld [vmem:[%s3954_s3] sm:$0xf]  ;;  %v3737_v29 = vld [vmem:[%s3955_s4 + $0x10] sm:$0xff]  ;;  %s3859_s28 = scalar_lea.vmem [#allocation2], %s2062_s10 }
 0x22f   : > { %v2190_v6 = vpop.f32.mrf.mxu1  ;;  %v1019_v31 = vmul.f32 1.442695, %v998_v32  ;;  %vm1011_vm8 = vcmp.gt.f32.partialorder %v998_v32, 0.0  ;;  %s1996_s13 = sshll.u32 %s3859_s28, 4  ;;  %s3899_s13 = int_to_ptr.vmem [resolvable:$true] %s1996_s13 }
 0x230   : > { %v1002_v20 = vpop.f32.mrf.mxu0  ;;  %v1367_v57 = vpop.permute.xlu1 %1366  ;;  %v3751_v6 = vld [vmem:[%s3955_s4] sm:$0xff]  ;;  %s2487_s25 = scalar_lea.vmem %s3899_s13, 128  ;;  %p2494_p0 = scmp.lt.s32.totalorder %s3899_s13, %s2492_s17 }
 0x231   : > { %v1003_v58 = vadd.f32 %v1002_v20, %v947_v46  ;;  %2466 = vpow2.f32 %v1019_v31  ;;  %p2488_p11 = scmp.ne.s32.totalorder %s3899_s13, %s2487_s25  ;;  %p2495_p1 = scmp.lt.s32.totalorder %s2493_s18, %s2487_s25 }
 0x232   : > { %v2312_v0 = vpop.f32.mrf.mxu0 }
 0x233   : > { %v1021_v37 = vmul.f32 1.442695, %v1003_v58  ;;  %vm1012_vm10 = vcmp.gt.f32.partialorder %v1003_v58, 0.0  ;;  %p2489_p12 = pnand %p2488_p11, %p2644_p5  ;;  %p2496_p2 = por %p2495_p1, %p2494_p0 }
 0x234   : > { %v1005_v53 = vpop.f32.mrf.mxu0  ;;  %v1376_v46 = vpop.permute.xlu1 %1375 }
 0x235   : > { %2468 = vpow2.f32 %v1021_v37  ;;  %p2490_p13 = pneg %p2489_p12 }
 0x236   : > { %v2313_v2 = vpop.f32.mrf.mxu0  ;;  %2470 = vpow2.f32 %v1017_v22 }
 0x237   : > { %2472 = vpow2.f32 %v1015_v9  ;;  %p2497_p3 = pnand %p2496_p2, %p2490_p13 }
 0x238   : > { %2474 = vpow2.f32 %v1013_v36  ;;  %v1576_v52 = vpop.permute.xlu1 %1575 }
 0x23c   : > { %v1352_v5 = vpop.permute.xlu1 %1351 }
 0x23e   : > { %v2467_v55 = vpop.eup %2466 }
 0x23f   : > { %v2086_v43 = vadd.f32 -1.0, %v2467_v55 }
 0x241   : > { %v1031_v18 = vsel %vm1011_vm8, %v998_v32, %v2086_v43  ;;  %vm4054_vm8 = vmmov %vm4052_vm7 }
 0x242   : > { %v2469_v41 = vpop.eup %2468 }
 0x243   : > { %v2087_v62 = vadd.f32 -1.0, %v2469_v41  ;;  %v2471_v56 = vpop.eup %2470 }
 0x244   : > { %v2085_v7 = vadd.f32 -1.0, %v2471_v56  ;;  %v2473_v19 = vpop.eup %2472 }
 0x245   : > { %v1032_v4 = vsel %vm1012_vm10, %v1003_v58, %v2087_v62  ;;  %v2084_v11 = vadd.f32 -1.0, %v2473_v19  ;;  %v2475_v15 = vpop.eup %2474  ;;  %vm4053_vm10 = vmmov %vm4052_vm7 }
 0x246   : > { %2315 = vmatpush3.xpose.msk.msra.mxu1 %vm4051_vm9, %v1032_v4  ;;  %v1030_v14 = vsel %vm1010_vm11, %v995_v23, %v2085_v7  ;;  %vm1009_vm9 = vcmp.gt.f32.partialorder %v990_v44, 0.0  ;;  %v2083_v1 = vadd.f32 -1.0, %v2475_v15  ;;  %vm4055_vm11 = vmmov %vm4054_vm8 }
 0x247   : > { %2316 = vmatprep.subr.mxu1 %v4038_v45  ;;  %v1586_v27 = vpop.permute.xlu0 %1585  ;;  %v1029_v54 = vsel %vm1009_vm9, %v990_v44, %v2084_v11  ;;  %vm4057_vm9 = vcmask 932864   ;;  %v1363_v44 = vpop.permute.xlu1 %1362 }
 0x248   : > { %v1610_v31 = vsel %vm709_vm15, %v1586_v27, %v3689_v49 }
 0x24a   : > { %2317 = vmatpush3.xpose.msk.msra.mxu1 %vm4052_vm7, %v1031_v18  ;;  %vm1008_vm7 = vcmp.gt.f32.partialorder %v987_v17, 0.0 }
 0x24b   : > { %2318 = vmatprep.subr.mxu1 %v4038_v45  ;;  %v1554_v3 = vpop.permute.xlu0 %1553  ;;  %v1028_v48 = vsel %vm1008_vm7, %v987_v17, %v2083_v1  ;;  %v1572_v10 = vpop.permute.xlu1 %1571 }
 0x24c   : > { %v3704_v8 = vsel %vm709_vm15, %v1554_v3, %v1556_v59 }
 0x24e   : > { %2319 = vmatpush3.xpose.msk.msra.mxu1 %vm4053_vm10, %v1030_v14  ;;  %vm4056_vm10 = vmmov %vm4054_vm8 }
 0x24f   : > { %2320 = vmatprep.subr.mxu1 %v4038_v45  ;;  %v1582_v26 = vpop.permute.xlu0 %1581  ;;  %v1568_v49 = vpop.permute.xlu1 %1567 }
 0x250   : > { %v3764_v37 = vsel %vm709_vm15, %v1582_v26, %v3695_v24 }
 0x252   : > { %2321 = vmatpush3.xpose.msk.msra.mxu1 %vm4054_vm8, %v1029_v54  ;;  %vm4058_vm8 = vmmov %vm4057_vm9 }
 0x253   : > { %2322 = vmatprep.subr.mxu1 %v4038_v45  ;;  %v1550_v63 = vpop.permute.xlu0 %1549  ;;  %v1348_v59 = vpop.permute.xlu1 %1347 }
 0x254   : > { %v3728_v32 = vsel %vm709_vm15, %v1550_v63, %v1552_v61 }
 0x256   : > { %2323 = vmatpush3.xpose.msk.msra.mxu1 %vm4055_vm11, %v1028_v48 }
 0x257   : > { %2327 = vmatprep.subr.mxu1 %v4038_v45  ;;  %v1578_v25 = vpop.permute.xlu0 %1577  ;;  %v1335_v62 = vpop.permute.xlu1 %1334 }
 0x258   : > { %v3769_v17 = vsel %vm709_vm15, %v1578_v25, %v1580_v60 }
 0x259   : > { %2325 = vmatmul.mubr.msk.f32.vlgmr.msra.gmra.mxu1 %vm4056_vm10, %v3712_v28 }
 0x25a   : > { %2328 = vmatpush3.msra.mxu1 %v3718_v21  ;;  %2337 = vmatprep.mubr.msk.f32.mxu1 %vm2567_vm13, %v4038_v45 }
 0x25b   : > { %2329 = vmatprep.subr.mxu1 %v4038_v45  ;;  %v1378_v20 = vpop.permute.xlu0 %1377  ;;  %v1344_v7 = vpop.permute.xlu1 %1343 }
 0x25c   : > { %2330 = vmatpush3.msra.mxu1 %v3725_v13  ;;  %v3758_v40 = vsel %vm473_vm3, %v1378_v20, %v1380_v47 }
 0x25d   : > { %2331 = vmatprep.subr.mxu1 %v4038_v45 }
 0x25e   : > { %2332 = vmatpush3.msra.mxu1 %v3737_v29 }
 0x25f   : > { %2333 = vmatprep.subr.mxu1 %v4038_v45  ;;  %v1365_v23 = vpop.permute.xlu0 %1364  ;;  %v1564_v60 = vpop.permute.xlu1 %1563 }
 0x260   : > { %2334 = vmatpush3.msra.mxu1 %v3744_v33  ;;  %v1369_v58 = vsel %vm4057_vm9, %v1365_v23, %v1367_v57 }
 0x261   : > { %2335 = vmatprep.subr.mxu1 %v4038_v45 }
 0x262   : > { %2336 = vmatpush3.msra.mxu1 %v3751_v6 }
 0x263   : > { %2244 = vmatprep.subr.bf16.mxu1 %v1610_v31  ;;  %v1374_v0 = vpop.permute.xlu0 %1373  ;;  %v1600_v14 = vpop.permute.xlu1 %1599 }
 0x264   : > { %v1381_v53 = vsel %vm473_vm3, %v1374_v0, %v1376_v46  ;;  %vm4059_vm3 = vcmask 949248  }
 0x265   : > { %v3773_v38 = vsel %vm350_vm6, %v1369_v58, %v1381_v53 }
 0x267   : > { %v1574_v34 = vpop.permute.xlu0 %1573  ;;  %v1322_v54 = vpop.permute.xlu1 %1321 }
 0x268   : > { %v3776_v41 = vsel %vm709_vm15, %v1574_v34, %v1576_v52 }
 0x26b   : > { %v1350_v22 = vpop.permute.xlu0 %1349  ;;  %v1331_v25 = vpop.permute.xlu1 %1330 }
 0x26c   : > { %v1355_v2 = vsel %vm443_vm4, %v1350_v22, %v1352_v5 }
 0x26f   : > { %v1361_v9 = vpop.permute.xlu0 %1360  ;;  %v1560_v58 = vpop.permute.xlu1 %1559 }
 0x270   : > { %v1368_v30 = vsel %vm4058_vm8, %v1361_v9, %v1363_v44 }
 0x271   : > { %v3786_v56 = vsel %vm342_vm0, %v1355_v2, %v1368_v30  ;;  %vm4060_vm0 = vmmov %vm4059_vm3 }
 0x273   : > { %v1570_v16 = vpop.permute.xlu0 %1569  ;;  %v1596_v9 = vpop.permute.xlu1 %1595 }
 0x274   : > { %v3783_v4 = vsel %vm709_vm15, %v1570_v16, %v1572_v10 }
 0x277   : > { %v1566_v36 = vpop.permute.xlu0 %1565 }
 0x278   : > { %v3789_v61 = vsel %vm709_vm15, %v1566_v36, %v1568_v49 }
 0x27b   : > { %v1346_v55 = vpop.permute.xlu0 %1345 }
 0x27c   : > { %v3779_v42 = vsel %vm443_vm4, %v1346_v55, %v1348_v59  ;;  %v1592_v59 = vpop.permute.xlu1 %1591 }
 0x27f   : > { %v1333_v24 = vpop.permute.xlu0 %1332 }
 0x280   : > { %v1337_v43 = vsel %vm4059_vm3, %v1333_v24, %v1335_v62 }
 0x283   : > { %v1342_v18 = vpop.permute.xlu0 %1341 }
 0x284   : > { %v1353_v19 = vsel %vm443_vm4, %v1342_v18, %v1344_v7  ;;  %v4061_v18 = vld [vmem:[#allocation9_spill] sm:$0xff] }
 0x285   : > { %v3793_v11 = vsel %vm331_vm1, %v1337_v43, %v1353_v19  ;;  %vm1128_vm1 = vcmask 326656  }
 0x287   : > { %v1562_v27 = vpop.permute.xlu0 %1561 }
 0x288   : > { %v1604_v47 = vsel %vm709_vm15, %v1562_v27, %v1564_v60  ;;  %v4062_v27 = vld [vmem:[#allocation12_spill] sm:$0xff] }
 0x28b   : > { %v1598_v15 = vpop.permute.xlu0 %1597 }
 0x28c   : > { %v1613_v3 = vsel %vm709_vm15, %v1598_v15, %v1600_v14  ;;  %v4063_v14 = vld [vmem:[#allocation18_spill] sm:$0xff] }
 0x28d   : > { %v1627_v1 = vsel %vm296_vm5, %v1613_v3, 0  ;;  %vm4069_vm5 = vmmov %vm4056_vm10 }
 0x28e   : > { %2341 = vmatpush3.bf16.msra.mxu0 %v1627_v1  ;;  %v2486_v1 = vld [vmem:[%s3952_s1 + $0xc] ss:$20 sps:$4 sm:$0xff]   ;;  %vm4072_vm11 = vmmov %vm4069_vm5 }
 0x28f   : > { %v1320_v26 = vpop.permute.xlu0 %1319  ;;  %2342 = vmatprep.subr.bf16.mxu0 %v4038_v45  ;;  %vm4073_vm9 = vmmov %vm4069_vm5 }
 0x290   : > { %v1324_v57 = vsel %vm411_vm12, %v1320_v26, %v1322_v54  ;;  %vm4070_vm12 = vmmov %vm4069_vm5 }
 0x291   : > { %vm4074_vm8 = vmmov %vm4069_vm5 }
 0x293   : > { %v1329_v31 = vpop.permute.xlu0 %1328 }
 0x294   : > { %v1336_v52 = vsel %vm4060_vm0, %v1329_v31, %v1331_v25 }
 0x295   : > { %v1426_v53 = vsel %vm323_vm2, %v1324_v57, %v1336_v52  ;;  %vm1202_vm2 = vcmask 322560  }
 0x297   : > { %v1558_v5 = vpop.permute.xlu0 %1557 }
 0x298   : > { %v1603_v22 = vsel %vm709_vm15, %v1558_v5, %v1560_v58 }
 0x29b   : > { %v1594_v10 = vpop.permute.xlu0 %1593 }
 0x29c   : > { %v1612_v16 = vsel %vm709_vm15, %v1594_v10, %v1596_v9 }
 0x29d   : > { %2343 = vmatpush3.bf16.msra.mxu0 %v1612_v16 }
 0x29e   : > { %2344 = vmatprep.subr.bf16.mxu0 %v4038_v45 }
 0x29f   : > { %v1590_v55 = vpop.permute.xlu0 %1589 }
 0x2a0   : > { %v1611_v24 = vsel %vm709_vm15, %v1590_v55, %v1592_v59  ;;  %vm4071_vm15 = vmmov %vm4069_vm5 }
 0x2a1   : > { %2345 = vmatpush3.bf16.msra.mxu0 %v1611_v24 }
 0x2a4   : > { %2347 = vmatmul.mubr.msk.bf16.vlgmr.msra.gmra.mxu0 %vm827_vm14, %v4061_v18 }
 0x2a5   : > { %2350 = vmatprep.mubr.msk.bf16.mxu0 %vm2567_vm13, %v4038_v45 }
 0x2a6   : > { %v2226_v48 = vpop.f32.mrf.mxu0 }
 0x2a8   : > { %v2227_v63 = vpop.f32.mrf.mxu0 }
 0x2a9   : > { %v3800_v46 = vadd.f32 %v2227_v63, %v2226_v48  ;;  %v3856_v63 = vld [vmem:[%s3956_s5] ss:$0 sm:$0xff] }
 0x2aa   : > { %v2229_v20 = vpop.f32.mrf.mxu0 }
 0x2ac   : > { %v2230_v23 = vpop.f32.mrf.mxu0  ;;  %2351 = vmatmul.mubr.msk.bf16.gmra.mxu0 %vm827_vm14, %v4062_v27 }
 0x2ad   : > { %v3803_v0 = vadd.f32 %v2230_v23, %v2229_v20  ;;  %2354 = vmatprep.mubr.msk.bf16.mxu0 %vm2567_vm13, %v4038_v45 }
 0x2ae   : > { %v2232_v34 = vpop.f32.mrf.mxu0 }
 0x2af   : > { %v1667_v27 = vadd.f32 %v3803_v0, %v4044_v12 }
 0x2b0   : > { %v2233_v44 = vpop.f32.mrf.mxu0 }
 0x2b1   : > { %v3807_v2 = vadd.f32 %v2233_v44, %v2232_v34 }
 0x2b2   : > { %v2235_v30 = vpop.f32.mrf.mxu0 }
 0x2b4   : > { %v2236_v49 = vpop.f32.mrf.mxu0  ;;  %2355 = vmatmul.mubr.msk.bf16.gmra.mxu0 %vm827_vm14, %v4063_v14 }
 0x2b5   : > { %v3811_v36 = vadd.f32 %v2236_v49, %v2235_v30  ;;  %v1672_v49 = vadd.f32 %v3807_v2, %v4042_v35  ;;  %v1664_v2 = vadd.f32 %v3800_v46, %v4045_v50 }
 0x2b6   : > { %v2238_v62 = vpop.f32.mrf.mxu0 }
 0x2b7   : > { %v1675_v9 = vadd.f32 %v3811_v36, %v4041_v39 }
 0x2b8   : > { %v2239_v43 = vpop.f32.mrf.mxu0 }
 0x2b9   : > { %v3814_v7 = vadd.f32 %v2239_v43, %v2238_v62 }
 0x2ba   : > { %v2241_v19 = vpop.f32.mrf.mxu0 }
 0x2bb   : > { %v1680_v55 = vadd.f32 %v3814_v7, %v4043_v51 }
 0x2bc   : > { %v2242_v60 = vpop.f32.mrf.mxu0 }
 0x319   : > { %v1118_v15 = vpop.f32.mrf.mxu1 }
 0x31a   : > { %2338 = vmatmul.mubr.msk.f32.vlgmr.msra.gmra.mxu1 %vm1128_vm1, %v1118_v15 }
 0x31b   : > { %2245 = vmatpush3.bf16.msra.mxu1 %v3704_v8  ;;  %v2326_v3 = vpop.f32.mrf.mxu1  ;;  %1717 = vmatprep.mubr.bf16.mxu1 %v2486_v1  ;;  %v4064_v8 = vld [vmem:[#allocation7_spill] sm:$0xff] }
 0x31c   : > { %2246 = vmatprep.subr.bf16.mxu1 %v3764_v37  ;;  %v4067_v37 = vld [vmem:[#allocation11_spill] sm:$0xff] }
 0x31f   : > { %2247 = vmatpush3.bf16.msra.mxu1 %v3728_v32  ;;  %v4065_v32 = vld [vmem:[#allocation8_spill] sm:$0xff] }
 0x320   : > { %2248 = vmatprep.subr.bf16.mxu1 %v3769_v17  ;;  %v4068_v17 = vld [vmem:[#allocation13_spill] sm:$0xff] }
 0x323   : > { %2249 = vmatpush3.bf16.msra.mxu1 %v3758_v40  ;;  %v4066_v40 = vld [vmem:[#allocation10_spill] sm:$0xff] }
 0x324   : > { %2250 = vmatprep.subr.bf16.mxu1 %v3776_v41 }
 0x327   : > { %2251 = vmatpush3.bf16.msra.mxu1 %v3773_v38 }
 0x328   : > { %2252 = vmatprep.subr.bf16.mxu1 %v3783_v4 }
 0x32b   : > { %2253 = vmatpush3.bf16.msra.mxu1 %v3786_v56 }
 0x32c   : > { %2254 = vmatprep.subr.bf16.mxu1 %v3789_v61 }
 0x32f   : > { %2255 = vmatpush3.bf16.msra.mxu1 %v3779_v42 }
 0x330   : > { %2256 = vmatprep.subr.bf16.mxu1 %v1604_v47 }
 0x333   : > { %2257 = vmatpush3.bf16.msra.mxu1 %v3793_v11 }
 0x334   : > { %2258 = vmatprep.subr.bf16.mxu1 %v1603_v22 }
 0x337   : > { %2259 = vmatpush3.bf16.msra.mxu1 %v1426_v53 }
 0x338   : > { %2358 = vmatprep.subr.mxu1 %v4038_v45 }
 0x33a   : > { %1718 = vmatmul.mubr.bf16.vlgmr.msra.gmra.mxu1 %v4064_v8 }
 0x33b   : > { %1725 = vmatprep.mubr.bf16.mxu1 %v4065_v32 }
 0x342   : > { %1726 = vmatmul.mubr.bf16.gmra.mxu1 %v4066_v40 }
 0x343   : > { %1733 = vmatprep.mubr.bf16.mxu1 %v4067_v37 }
 0x34a   : > { %1734 = vmatmul.mubr.bf16.gmra.mxu1 %v4068_v17 }
 0x34b   : > { %2368 = vmatprep.mubr.msk.f32.mxu1 %vm2567_vm13, %v4038_v45 }
 0x364   : > { %v1775_v38 = vpop.f32.mrf.mxu0 }
 0x366   : > { %v2348_v41 = vpop.f32.mrf.mxu0 }
 0x368   : > { %v1778_v42 = vpop.f32.mrf.mxu0 }
 0x36a   : > { %v2349_v4 = vpop.f32.mrf.mxu0 }
 0x36c   : > { %v1783_v56 = vpop.f32.mrf.mxu0 }
 0x36e   : > { %v2352_v61 = vpop.f32.mrf.mxu0 }
 0x370   : > { %v1786_v11 = vpop.f32.mrf.mxu0 }
 0x372   : > { %v2353_v47 = vpop.f32.mrf.mxu0 }
 0x374   : > { %v1791_v54 = vpop.f32.mrf.mxu0 }
 0x376   : > { %v2356_v26 = vpop.f32.mrf.mxu0 }
 0x378   : > { %v1794_v48 = vpop.f32.mrf.mxu0 }
 0x37a   : > { %v2357_v57 = vpop.f32.mrf.mxu0 }
 0x3da   : > { %v1198_v25 = vpop.f32.mrf.mxu1 }
 0x3db   : > { %v1199_v31 = vadd.f32 %v3856_v63, %v1198_v25 }
 0x3dc   : > { %v2339_v20 = vpop.f32.mrf.mxu1 }
 0x3dd   : > { %1203 = vst.msk [vmem:[%s3859_s28] sm:$0xf] %vm1202_vm2, %v1199_v31 }
 0x3fa   : > { %v2260_v52 = vpop.f32.mrf.mxu1 }
 0x3fc   : > { %v2261_v23 = vpop.f32.mrf.mxu1 }
 0x3fd   : > { %v2262_v15 = vadd.f32 %v2261_v23, %v2260_v52 }
 0x3fe   : > { %v2263_v58 = vpop.f32.mrf.mxu1 }
 0x3ff   : > { %v1720_v7 = vadd.f32 %v2262_v15, %v1664_v2 }
 0x400   : > { %v2264_v5 = vpop.f32.mrf.mxu1 }
 0x401   : > { %v2265_v24 = vadd.f32 %v2264_v5, %v2263_v58  ;;  %v1776_v40 = vadd.f32 %v1775_v38, %v1720_v7 }
 0x402   : > { %v2266_v53 = vpop.f32.mrf.mxu1 }
 0x403   : > { %v1723_v3 = vadd.f32 %v2265_v24, %v1667_v27  ;;  %v1802_v12 = vmul.f32 1.442695, %v1776_v40  ;;  %vm1797_vm10 = vcmp.gt.f32.partialorder %v1776_v40, 0.0 }
 0x404   : > { %v2267_v34 = vpop.f32.mrf.mxu1 }
 0x405   : > { %v2268_v10 = vadd.f32 %v2267_v34, %v2266_v53  ;;  %v1779_v8 = vadd.f32 %v1778_v42, %v1723_v3 }
 0x406   : > { %v2269_v44 = vpop.f32.mrf.mxu1 }
 0x407   : > { %v1728_v43 = vadd.f32 %v2268_v10, %v1672_v49  ;;  %v1804_v37 = vmul.f32 1.442695, %v1779_v8  ;;  %vm1798_vm7 = vcmp.gt.f32.partialorder %v1779_v8, 0.0 }
 0x408   : > { %v2270_v22 = vpop.f32.mrf.mxu1 }
 0x409   : > { %v2271_v30 = vadd.f32 %v2270_v22, %v2269_v44  ;;  %v1784_v1 = vadd.f32 %v1783_v56, %v1728_v43 }
 0x40a   : > { %v2272_v16 = vpop.f32.mrf.mxu1 }
 0x40b   : > { %v1731_v59 = vadd.f32 %v2271_v30, %v1675_v9  ;;  %v1806_v32 = vmul.f32 1.442695, %v1784_v1  ;;  %vm1799_vm14 = vcmp.gt.f32.partialorder %v1784_v1, 0.0 }
 0x40c   : > { %v2273_v62 = vpop.f32.mrf.mxu1 }
 0x40d   : > { %v1787_v18 = vadd.f32 %v1786_v11, %v1731_v59  ;;  %v2274_v19 = vadd.f32 %v2273_v62, %v2272_v16 }
 0x40e   : > { %v2275_v60 = vpop.f32.mrf.mxu1 }
 0x40f   : > { %v1736_v39 = vadd.f32 %v2274_v19, %v1680_v55  ;;  %v1808_v36 = vmul.f32 1.442695, %v1787_v18  ;;  %vm1800_vm6 = vcmp.gt.f32.partialorder %v1787_v18, 0.0 }
 0x410   : > { %v2276_v14 = vpop.f32.mrf.mxu1 }
 0x411   : > { %v1792_v35 = vadd.f32 %v1791_v54, %v1736_v39  ;;  %2476 = vpow2.f32 %v1808_v36 }
 0x413   : > { %v1810_v51 = vmul.f32 1.442695, %v1792_v35  ;;  %vm1801_vm4 = vcmp.gt.f32.partialorder %v1792_v35, 0.0 }
 0x415   : > { %2478 = vpow2.f32 %v1810_v51 }
 0x416   : > { %2480 = vpow2.f32 %v1806_v32 }
 0x417   : > { %2482 = vpow2.f32 %v1804_v37 }
 0x418   : > { %2484 = vpow2.f32 %v1802_v12 }
 0x41e   : > { %v2477_v0 = vpop.eup %2476 }
 0x41f   : > { %v2108_v4 = vadd.f32 -1.0, %v2477_v0 }
 0x421   : > { %v1820_v46 = vsel %vm1800_vm6, %v1787_v18, %v2108_v4 }
 0x422   : > { %v2479_v17 = vpop.eup %2478 }
 0x423   : > { %v2109_v41 = vadd.f32 -1.0, %v2479_v17  ;;  %v2481_v61 = vpop.eup %2480 }
 0x424   : > { %v2107_v50 = vadd.f32 -1.0, %v2481_v61  ;;  %v2483_v38 = vpop.eup %2482 }
 0x425   : > { %v1821_v56 = vsel %vm1801_vm4, %v1792_v35, %v2109_v41  ;;  %v2106_v42 = vadd.f32 -1.0, %v2483_v38  ;;  %v2485_v47 = vpop.eup %2484 }
 0x426   : > { %2359 = vmatpush3.xpose.msk.msra.mxu1 %vm4069_vm5, %v1821_v56  ;;  %v1819_v11 = vsel %vm1799_vm14, %v1784_v1, %v2107_v50  ;;  %v2105_v54 = vadd.f32 -1.0, %v2485_v47 }
 0x427   : > { %2360 = vmatprep.subr.mxu1 %v4038_v45  ;;  %v1818_v26 = vsel %vm1798_vm7, %v1779_v8, %v2106_v42 }
 0x428   : > { %v1817_v48 = vsel %vm1797_vm10, %v1776_v40, %v2105_v54 }
 0x42a   : > { %2361 = vmatpush3.xpose.msk.msra.mxu1 %vm4070_vm12, %v1820_v46 }
 0x42b   : > { %2362 = vmatprep.subr.mxu1 %v4038_v45 }
 0x42e   : > { %2363 = vmatpush3.xpose.msk.msra.mxu1 %vm4071_vm15, %v1819_v11 }
 0x42f   : > { %2364 = vmatprep.subr.mxu1 %v4038_v45 }
 0x432   : > { %2365 = vmatpush3.xpose.msk.msra.mxu1 %vm4072_vm11, %v1818_v26 }
 0x433   : > { %2366 = vmatprep.subr.mxu1 %v4038_v45 }
 0x436   : > { %2367 = vmatpush3.xpose.msk.msra.mxu1 %vm4073_vm9, %v1817_v48 }
 0x437   : > { %2371 = vmatprep.subr.mxu1 %v4038_v45 }
 0x439   : > { %2369 = vmatmul.mubr.msk.f32.vlgmr.msra.gmra.mxu1 %vm4074_vm8, %v3712_v28 }
 0x43a   : > { %2372 = vmatpush3.msra.mxu1 %v3718_v21  ;;  %2381 = vmatprep.mubr.msk.f32.mxu1 %vm2567_vm13, %v4038_v45 }
 0x43b   : > { %2373 = vmatprep.subr.mxu1 %v4038_v45 }
 0x43c   : > { %2374 = vmatpush3.msra.mxu1 %v3725_v13 }
 0x43d   : > { %2375 = vmatprep.subr.mxu1 %v4038_v45 }
 0x43e   : > { %2376 = vmatpush3.msra.mxu1 %v3737_v29 }
 0x43f   : > { %2377 = vmatprep.subr.mxu1 %v4038_v45 }
 0x440   : > { %2378 = vmatpush3.msra.mxu1 %v3744_v33 }
 0x441   : > { %2379 = vmatprep.subr.mxu1 %v4038_v45 }
 0x442   : > { %2380 = vmatpush3.msra.mxu1 %v3751_v6 }
 0x4f9   : > { %v1903_v28 = vpop.f32.mrf.mxu1 }
 0x4fa   : > { %2382 = vmatmul.mubr.msk.f32.vlgmr.msra.gmra.mxu1 %vm1128_vm1, %v1903_v28 }
 0x4fb   : > { %v2370_v21 = vpop.f32.mrf.mxu1 }
 0x5ba   : > { %v1976_v13 = vpop.f32.mrf.mxu1 }
 0x5bb   : > { %v1977_v45 = vadd.f32 %v3856_v63, %v1976_v13 }
 0x5bc   : > { %v2383_v29 = vpop.f32.mrf.mxu1 }
 0x5bd   : > { %2117 = vst.msk [vmem:[%s3859_s28 + $0x4] sm:$0xf] %vm1202_vm2, %v1977_v45 }
 0x5be   : > { %2500 = shalt.err (!%p2497_p3)
}
 0x5bf   : > { %s2501_s19 = scalar_lea.hbm %s3904_s12, 128  ;;  %s2505_s15 = scalar_lea.hbm %s3957_s6, 256 }
 0x5c0   : > { %p2502_p4 = scmp.ne.s32.totalorder %s3904_s12, %s2501_s19  ;;  %p2506_p9 = scmp.lt.s32.totalorder %s3904_s12, %s3957_s6 }
 0x5c1   : > { %p2507_p10 = scmp.lt.s32.totalorder %s2505_s15, %s2501_s19 }
 0x5c2   : > { %p2503_p7 = pnand %p2502_p4, %p2644_p5 }
 0x5c3   : > { %p2508_p11 = por %p2507_p10, %p2506_p9 }
 0x5c4   : > { %p2504_p8 = pneg %p2503_p7 }
 0x5c6   : > { %p2509_p12 = pnand %p2508_p11, %p2504_p8 }
 0x5c8   : > { %2512 = shalt.err (!%p2509_p12)
}
 0x5c9   : > { %s2569_s29 = smov 64   ;;  %s2570_s9 = smov 4  }
 0x5ca   : > { %2385 = dma.vmem_to_hbm [thread:$0]  (%p2644_p5), %s3899_s13, 128, %s3904_s12, %s3911_s14, %s2569_s29, %s2569_s29, %s2570_s9  }
 0x5cb PF: > { %p2391_p13 = scmp.ge.s32.totalorder %s2547_s24, 2  ;;  %s2011_s11 = sand.u32 1, %s2535_s21  }
 0x5cc   : > { %s2012_s25 = scalar_lea.sflag [#allocation3], %s2011_s11 }
 0x5cd   : > { %p2388_p0 = pnand %p2391_p13, %p2648_p6 }
 0x5cf   : > { %p2389_p1 = pneg %p2388_p0 }
 0x5d1   : > { %2530 = dma.done.wait (%p2389_p1), %s2012_s25, 128  }
 0x5d2   : > { %2532 = vsyncadd (%p2389_p1), %s2012_s25, 4294967168  ;;  %p16_p2 = scmp.ge.s32.totalorder %s2631_s27, 4   ;;  %s4075_s21 = smov %s2539_s22 }
 0x5d3   : > { %s4076_s22 = smov %s2543_s23  ;;  %s4077_s23 = smov %s2642_s30 }
 0x5d4   : > { %s4078_s24 = smov %s2631_s27  ;;  %18 = sbr.rel (!%p16_p2) target bundleno = 3 (0x3), region = 81 }
 0x5d9   :  { %2017 = vsyncpa [#allocation3], 1 }
 0x5da   :  { %2019 = vsyncpa [#allocation3 + $0x1], 1 }

</bundles_post_ra>
